<compile_context>
chip_gen: v6e
topology: v6e:2x2x1
jax: 0.10.0
libtpu: 0.0.40
codegen_flags: <defaults>
</compile_context>

<pallas_src>
import functools
import math

import jax
import jax.numpy as jnp
from jax.experimental import pallas as pl
from jax.experimental.pallas import tpu as pltpu


# ----------------------------- Pallas kernel ------------------------------- #

def _fused_lstm_fc_kernel(*refs, S, B, H, num_layers):
    """Fused multi-layer LSTM + Linear + Sigmoid (single invocation, no grid).

    refs = (x, [w_ih_l, w_hh_l, b_l] * num_layers, w_fc, b_fc,   # inputs
            out,                                                  # output
            gates_scr, hs_scr)                                    # VMEM scratch

      x:         (S*B, D)      time-major, flattened (row = t*B + b)
      w_ih_l:    (d_in, 4*H)   input->gates, pre-transposed, gate order i|f|g|o
      w_hh_l:    (H, 4*H)      hidden->gates, pre-transposed
      b_l:       (1, 4*H)      b_ih + b_hh
      w_fc:      (H, C)        fc weight^T
      b_fc:      (1, C)
      out:       (B, C)
      gates_scr: (S*B, 4*H)    per-layer hoisted input projection
      hs_scr:    (S*B, H)      next layer's input sequence
    """
    n_in = 1 + 3 * num_layers + 2
    x_ref = refs[0]
    w_refs = refs[1:n_in]
    out_ref = refs[n_in]
    gates_scr = refs[n_in + 1]
    hs_scr = refs[n_in + 2]

    h = None
    for l in range(num_layers):
        w_ih = w_refs[3 * l][...]                       # (d_in, 4H)
        w_hh = w_refs[3 * l + 1][...]                   # (H, 4H)
        b = w_refs[3 * l + 2][...]                      # (1, 4H)

        inp = x_ref[...] if l == 0 else hs_scr[...]     # (S*B, d_in)

        # Hoisted input projection + bias for all S timesteps at once (one MXU
        # matmul with M = S*B), staged in VMEM scratch so the unrolled time
        # loop reads a plain B-row slice per step instead of extracting
        # sublanes from a long-lived vreg value.
        gates_scr[...] = jnp.dot(inp, w_ih,
                                 preferred_element_type=jnp.float32) + b

        h = jnp.zeros((B, H), jnp.float32)
        c = jnp.zeros((B, H), jnp.float32)
        for t in range(S):                              # fully unrolled (static S)
            # Only h @ w_hh (1x32 @ 32x128) sits on the serial critical path.
            g_t = gates_scr[t * B:(t + 1) * B, :] + jnp.dot(
                h, w_hh, preferred_element_type=jnp.float32)        # (B, 4H)

            # One sigmoid over the single (B, 4H = 128-lane) vreg; tanh only on
            # the 32-lane g slice; one more tanh on c.  The unused sigmoid(g)
            # lanes ride along in the same vreg for free.
            sig = jax.nn.sigmoid(g_t)
            i_g = sig[:, 0 * H:1 * H]
            f_g = sig[:, 1 * H:2 * H]
            o_g = sig[:, 3 * H:4 * H]
            g_g = jnp.tanh(g_t[:, 2 * H:3 * H])

            c = f_g * c + i_g * g_g
            h = o_g * jnp.tanh(c)
            if l < num_layers - 1:
                hs_scr[t * B:(t + 1) * B, :] = h        # next layer's input row

    # Final Linear + Sigmoid on h_n of the last layer; single small HBM store.
    w_fc = w_refs[3 * num_layers][...]                  # (H, C)
    b_fc = w_refs[3 * num_layers + 1][...]              # (1, C)
    out_ref[...] = jax.nn.sigmoid(
        jnp.dot(h, w_fc, preferred_element_type=jnp.float32) + b_fc)


# ------------------------------- Wrapper ------------------------------------ #

def lstm_model_forward(x_bsD, packed):
    """Reproduces LSTM.forward: multi-layer LSTM -> hn[-1] -> fc -> sigmoid.

    x_bsD: (B, S, input_size), batch_first like the PyTorch module.
    packed: output of pack_params() (pre-transposed weights, combined bias).
    """
    B, S, D = x_bsD.shape
    H = packed["H"]
    num_layers = packed["num_layers"]
    C = packed["w_fc"].shape[1]

    # time-major, flattened: row index = t*B + b
    x2d = jnp.transpose(x_bsD, (1, 0, 2)).reshape(S * B, D).astype(jnp.float32)

    operands = [x2d]
    for layer in packed["layers"]:
        operands += [layer["w_ih"], layer["w_hh"], layer["b"]]
    operands += [packed["w_fc"], packed["b_fc"]]

    # Advisory cost estimate so XLA schedules around the (latency-bound) call.
    flops = 0
    transcendentals = 0
    d_in = D
    for _ in range(num_layers):
        flops += 2 * S * B * d_in * 4 * H          # hoisted input projection
        flops += 2 * S * B * H * 4 * H             # recurrent matmuls
        transcendentals += S * B * 6 * H           # sigmoid(4H) + tanh(H) + tanh(H)
        d_in = H
    flops += 2 * B * H * C
    transcendentals += B * C
    bytes_accessed = sum(int(o.size) * o.dtype.itemsize for o in operands) + B * C * 4

    kernel = functools.partial(_fused_lstm_fc_kernel,
                               S=S, B=B, H=H, num_layers=num_layers)

    # No grid: every operand (all KB-scale) is mapped whole into VMEM; the only
    # HBM write is the (B, C) output.
    return pl.pallas_call(
        kernel,
        out_shape=jax.ShapeDtypeStruct((B, C), jnp.float32),
        in_specs=[pl.BlockSpec(memory_space=pltpu.MemorySpace.VMEM)] * len(operands),
        out_specs=pl.BlockSpec(memory_space=pltpu.MemorySpace.VMEM),
        scratch_shapes=[
            pltpu.VMEM((S * B, 4 * H), jnp.float32),   # gates_scr
            pltpu.VMEM((S * B, H), jnp.float32),       # hs_scr
        ],
        cost_estimate=pl.CostEstimate(flops=flops,
                                      transcendentals=transcendentals,
                                      bytes_accessed=bytes_accessed),
    )(*operands)


# ------------------------- Parameter init & packing ------------------------- #

def init_params(key, num_classes, input_size, hidden_size, num_layers):
    """Deterministic init mirroring PyTorch's U(-1/sqrt(H), 1/sqrt(H)); raw torch layout."""
    k = 1.0 / math.sqrt(hidden_size)
    layers = []
    for l in range(num_layers):
        d_in = input_size if l == 0 else hidden_size
        key, k1, k2, k3, k4 = jax.random.split(key, 5)
        layers.append({
            "w_ih": jax.random.uniform(k1, (4 * hidden_size, d_in), jnp.float32, -k, k),
            "w_hh": jax.random.uniform(k2, (4 * hidden_size, hidden_size), jnp.float32, -k, k),
            "b_ih": jax.random.uniform(k3, (4 * hidden_size,), jnp.float32, -k, k),
            "b_hh": jax.random.uniform(k4, (4 * hidden_size,), jnp.float32, -k, k),
        })
    key, k5, k6 = jax.random.split(key, 3)
    fc = {
        "w": jax.random.uniform(k5, (num_classes, hidden_size), jnp.float32, -k, k),
        "b": jax.random.uniform(k6, (num_classes,), jnp.float32, -k, k),
    }
    return {"lstm": layers, "fc": fc, "hidden_size": hidden_size,
            "input_size": input_size, "num_layers": num_layers}


def pack_params(params):
    """Pre-transpose weights and combine biases for the fused kernel.

    No gate padding: with H=32 the gate vector 4*H = 128 is already one full
    lane tile, so the kernel works directly on PyTorch's i|f|g|o column layout.
    """
    packed_layers = []
    for layer in params["lstm"]:
        packed_layers.append({
            "w_ih": layer["w_ih"].T,                         # (d_in, 4H)
            "w_hh": layer["w_hh"].T,                         # (H, 4H)
            "b": (layer["b_ih"] + layer["b_hh"])[None, :],   # (1, 4H)
        })
    return {
        "layers": packed_layers,
        "w_fc": params["fc"]["w"].T,                         # (H, C)
        "b_fc": params["fc"]["b"][None, :],                  # (1, C)
        "H": params["hidden_size"],
        "num_layers": params["num_layers"],
    }


# ------------------------------ JAX reference ------------------------------- #

def reference_forward(x_bsD, params):
    x = jnp.transpose(x_bsD, (1, 0, 2)).astype(jnp.float32)   # (S, B, D)
    S, B, _ = x.shape
    H = params["hidden_size"]
    for layer in params["lstm"]:
        h = jnp.zeros((B, H), jnp.float32)
        c = jnp.zeros((B, H), jnp.float32)
        w_ih_T = layer["w_ih"].T
        w_hh_T = layer["w_hh"].T
        bias = (layer["b_ih"] + layer["b_hh"])[None, :]
        ys = []
        for t in range(S):
            gates = x[t] @ w_ih_T + h @ w_hh_T + bias
            i = jax.nn.sigmoid(gates[:, 0 * H:1 * H])
            f = jax.nn.sigmoid(gates[:, 1 * H:2 * H])
            g = jnp.tanh(gates[:, 2 * H:3 * H])
            o = jax.nn.sigmoid(gates[:, 3 * H:4 * H])
            c = f * c + i * g
            h = o * jnp.tanh(c)
            ys.append(h)
        x = jnp.stack(ys, axis=0)
    h_last = x[-1]
    return jax.nn.sigmoid(h_last @ params["fc"]["w"].T + params["fc"]["b"][None, :])


# ---------------------------------- Main ------------------------------------ #

if __name__ == "__main__":
    num_classes = 4
    input_size = 4
    hidden_size = 32
    num_layers = 2
    batch = 1          # module hardcodes h0/c0 batch dim = 1
    seq = 8

    key = jax.random.PRNGKey(0)
    key, kx = jax.random.split(key)
    x = jax.random.normal(kx, (batch, seq, input_size), jnp.float32)

    params = init_params(key, num_classes, input_size, hidden_size, num_layers)
    packed = pack_params(params)

    fwd = jax.jit(lambda xb: lstm_model_forward(xb, packed))
    out = jax.block_until_ready(fwd(x))

    ref = reference_forward(x, params)
    assert out.shape == (batch, num_classes)
    assert jnp.allclose(out, ref, rtol=1e-4, atol=1e-5), "mismatch vs reference"

    print("KERNEL_OK")
</pallas_src>

<mosaic_0001>
module attributes {stable_mosaic.version = 11 : i64} {
  func.func @_fused_lstm_fc_kernel(%arg0: memref<8x4xf32, #tpu.memory_space<vmem>>, %arg1: memref<4x128xf32, #tpu.memory_space<vmem>>, %arg2: memref<32x128xf32, #tpu.memory_space<vmem>>, %arg3: memref<1x128xf32, #tpu.memory_space<vmem>>, %arg4: memref<32x128xf32, #tpu.memory_space<vmem>>, %arg5: memref<32x128xf32, #tpu.memory_space<vmem>>, %arg6: memref<1x128xf32, #tpu.memory_space<vmem>>, %arg7: memref<32x4xf32, #tpu.memory_space<vmem>>, %arg8: memref<1x4xf32, #tpu.memory_space<vmem>>, %arg9: memref<1x4xf32, #tpu.memory_space<vmem>>, %arg10: memref<8x128xf32, #tpu.memory_space<vmem>>, %arg11: memref<8x32xf32, #tpu.memory_space<vmem>>) attributes {dimension_semantics = [], scalar_prefetch = 0 : i64, scratch_operands = 2 : i64, tpu.core_type = #tpu.core_type<tc>} {
    %c0 = arith.constant 0 : index
    %c0_0 = arith.constant 0 : index
    %0 = vector.load %arg1[%c0, %c0_0] : memref<4x128xf32, #tpu.memory_space<vmem>>, vector<4x128xf32>
    %c0_1 = arith.constant 0 : index
    %c0_2 = arith.constant 0 : index
    %1 = vector.load %arg2[%c0_1, %c0_2] : memref<32x128xf32, #tpu.memory_space<vmem>>, vector<32x128xf32>
    %c0_3 = arith.constant 0 : index
    %c0_4 = arith.constant 0 : index
    %2 = vector.load %arg3[%c0_3, %c0_4] : memref<1x128xf32, #tpu.memory_space<vmem>>, vector<1x128xf32>
    %c0_5 = arith.constant 0 : index
    %c0_6 = arith.constant 0 : index
    %3 = vector.load %arg0[%c0_5, %c0_6] : memref<8x4xf32, #tpu.memory_space<vmem>>, vector<8x4xf32>
    %cst = arith.constant dense<0.000000e+00> : vector<8x128xf32>
    %4 = tpu.matmul %3, %0, %cst {dimension_numbers = #tpu.dot_dimension_numbers<[1], [0], [0], [1], [0, 0, 1, 1], [], []>} : vector<8x4xf32>, vector<4x128xf32>, vector<8x128xf32> -> vector<8x128xf32>
    %5 = vector.broadcast %2 : vector<1x128xf32> to vector<8x128xf32>
    %6 = arith.addf %4, %5 : vector<8x128xf32>
    %c0_7 = arith.constant 0 : index
    %c0_8 = arith.constant 0 : index
    %7 = vector.load %arg10[%c0_7, %c0_8] : memref<8x128xf32, #tpu.memory_space<vmem>>, vector<8x128xf32>
    tpu.vector_store %arg10[%c0_7, %c0_8], %6 {strides = array<i32>} : memref<8x128xf32, #tpu.memory_space<vmem>>, vector<8x128xf32>,
    %cst_9 = arith.constant 0.000000e+00 : f32
    %8 = vector.broadcast %cst_9 : f32 to vector<1x32xf32>
    %cst_10 = arith.constant 0.000000e+00 : f32
    %9 = vector.broadcast %cst_10 : f32 to vector<1x32xf32>
    %c0_11 = arith.constant 0 : index
    %c0_12 = arith.constant 0 : index
    %10 = vector.load %arg10[%c0_11, %c0_12] : memref<8x128xf32, #tpu.memory_space<vmem>>, vector<1x128xf32>
    %cst_13 = arith.constant dense<0.000000e+00> : vector<1x128xf32>
    %11 = tpu.matmul %8, %1, %cst_13 {dimension_numbers = #tpu.dot_dimension_numbers<[1], [0], [0], [1], [0, 0, 1, 1], [], []>} : vector<1x32xf32>, vector<32x128xf32>, vector<1x128xf32> -> vector<1x128xf32>
    %12 = arith.addf %10, %11 : vector<1x128xf32>
    %13 = arith.negf %12 : vector<1x128xf32>
    %14 = math.exp %13 : vector<1x128xf32>
    %cst_14 = arith.constant 1.000000e+00 : f32
    %15 = vector.broadcast %cst_14 : f32 to vector<1x128xf32>
    %16 = arith.addf %15, %14 : vector<1x128xf32>
    %17 = arith.divf %15, %16 : vector<1x128xf32>
    %18 = vector.extract_strided_slice %17 {offsets = [0, 0], sizes = [1, 32], strides = [1, 1]} : vector<1x128xf32> to vector<1x32xf32>
    %19 = vector.extract_strided_slice %17 {offsets = [0, 32], sizes = [1, 32], strides = [1, 1]} : vector<1x128xf32> to vector<1x32xf32>
    %20 = vector.extract_strided_slice %17 {offsets = [0, 96], sizes = [1, 32], strides = [1, 1]} : vector<1x128xf32> to vector<1x32xf32>
    %21 = vector.extract_strided_slice %12 {offsets = [0, 64], sizes = [1, 32], strides = [1, 1]} : vector<1x128xf32> to vector<1x32xf32>
    %22 = math.tanh %21 : vector<1x32xf32>
    %23 = arith.mulf %19, %9 : vector<1x32xf32>
    %24 = arith.mulf %18, %22 : vector<1x32xf32>
    %25 = arith.addf %23, %24 : vector<1x32xf32>
    %26 = math.tanh %25 : vector<1x32xf32>
    %27 = arith.mulf %20, %26 : vector<1x32xf32>
    %c0_15 = arith.constant 0 : index
    %c0_16 = arith.constant 0 : index
    %28 = vector.load %arg11[%c0_15, %c0_16] : memref<8x32xf32, #tpu.memory_space<vmem>>, vector<1x32xf32>
    tpu.vector_store %arg11[%c0_15, %c0_16], %27 {strides = array<i32>} : memref<8x32xf32, #tpu.memory_space<vmem>>, vector<1x32xf32>,
    %c1 = arith.constant 1 : index
    %c0_17 = arith.constant 0 : index
    %29 = vector.load %arg10[%c1, %c0_17] : memref<8x128xf32, #tpu.memory_space<vmem>>, vector<1x128xf32>
    %cst_18 = arith.constant dense<0.000000e+00> : vector<1x128xf32>
    %30 = tpu.matmul %27, %1, %cst_18 {dimension_numbers = #tpu.dot_dimension_numbers<[1], [0], [0], [1], [0, 0, 1, 1], [], []>} : vector<1x32xf32>, vector<32x128xf32>, vector<1x128xf32> -> vector<1x128xf32>
    %31 = arith.addf %29, %30 : vector<1x128xf32>
    %32 = arith.negf %31 : vector<1x128xf32>
    %33 = math.exp %32 : vector<1x128xf32>
    %cst_19 = arith.constant 1.000000e+00 : f32
    %34 = vector.broadcast %cst_19 : f32 to vector<1x128xf32>
    %35 = arith.addf %34, %33 : vector<1x128xf32>
    %36 = arith.divf %34, %35 : vector<1x128xf32>
    %37 = vector.extract_strided_slice %36 {offsets = [0, 0], sizes = [1, 32], strides = [1, 1]} : vector<1x128xf32> to vector<1x32xf32>
    %38 = vector.extract_strided_slice %36 {offsets = [0, 32], sizes = [1, 32], strides = [1, 1]} : vector<1x128xf32> to vector<1x32xf32>
    %39 = vector.extract_strided_slice %36 {offsets = [0, 96], sizes = [1, 32], strides = [1, 1]} : vector<1x128xf32> to vector<1x32xf32>
    %40 = vector.extract_strided_slice %31 {offsets = [0, 64], sizes = [1, 32], strides = [1, 1]} : vector<1x128xf32> to vector<1x32xf32>
    %41 = math.tanh %40 : vector<1x32xf32>
    %42 = arith.mulf %38, %25 : vector<1x32xf32>
    %43 = arith.mulf %37, %41 : vector<1x32xf32>
    %44 = arith.addf %42, %43 : vector<1x32xf32>
    %45 = math.tanh %44 : vector<1x32xf32>
    %46 = arith.mulf %39, %45 : vector<1x32xf32>
    %c1_20 = arith.constant 1 : index
    %c0_21 = arith.constant 0 : index
    %47 = vector.load %arg11[%c1_20, %c0_21] : memref<8x32xf32, #tpu.memory_space<vmem>>, vector<1x32xf32>
    tpu.vector_store %arg11[%c1_20, %c0_21], %46 {strides = array<i32>} : memref<8x32xf32, #tpu.memory_space<vmem>>, vector<1x32xf32>,
    %c2 = arith.constant 2 : index
    %c0_22 = arith.constant 0 : index
    %48 = vector.load %arg10[%c2, %c0_22] : memref<8x128xf32, #tpu.memory_space<vmem>>, vector<1x128xf32>
    %cst_23 = arith.constant dense<0.000000e+00> : vector<1x128xf32>
    %49 = tpu.matmul %46, %1, %cst_23 {dimension_numbers = #tpu.dot_dimension_numbers<[1], [0], [0], [1], [0, 0, 1, 1], [], []>} : vector<1x32xf32>, vector<32x128xf32>, vector<1x128xf32> -> vector<1x128xf32>
    %50 = arith.addf %48, %49 : vector<1x128xf32>
    %51 = arith.negf %50 : vector<1x128xf32>
    %52 = math.exp %51 : vector<1x128xf32>
    %cst_24 = arith.constant 1.000000e+00 : f32
    %53 = vector.broadcast %cst_24 : f32 to vector<1x128xf32>
    %54 = arith.addf %53, %52 : vector<1x128xf32>
    %55 = arith.divf %53, %54 : vector<1x128xf32>
    %56 = vector.extract_strided_slice %55 {offsets = [0, 0], sizes = [1, 32], strides = [1, 1]} : vector<1x128xf32> to vector<1x32xf32>
    %57 = vector.extract_strided_slice %55 {offsets = [0, 32], sizes = [1, 32], strides = [1, 1]} : vector<1x128xf32> to vector<1x32xf32>
    %58 = vector.extract_strided_slice %55 {offsets = [0, 96], sizes = [1, 32], strides = [1, 1]} : vector<1x128xf32> to vector<1x32xf32>
    %59 = vector.extract_strided_slice %50 {offsets = [0, 64], sizes = [1, 32], strides = [1, 1]} : vector<1x128xf32> to vector<1x32xf32>
    %60 = math.tanh %59 : vector<1x32xf32>
    %61 = arith.mulf %57, %44 : vector<1x32xf32>
    %62 = arith.mulf %56, %60 : vector<1x32xf32>
    %63 = arith.addf %61, %62 : vector<1x32xf32>
    %64 = math.tanh %63 : vector<1x32xf32>
    %65 = arith.mulf %58, %64 : vector<1x32xf32>
    %c2_25 = arith.constant 2 : index
    %c0_26 = arith.constant 0 : index
    %66 = vector.load %arg11[%c2_25, %c0_26] : memref<8x32xf32, #tpu.memory_space<vmem>>, vector<1x32xf32>
    tpu.vector_store %arg11[%c2_25, %c0_26], %65 {strides = array<i32>} : memref<8x32xf32, #tpu.memory_space<vmem>>, vector<1x32xf32>,
    %c3 = arith.constant 3 : index
    %c0_27 = arith.constant 0 : index
    %67 = vector.load %arg10[%c3, %c0_27] : memref<8x128xf32, #tpu.memory_space<vmem>>, vector<1x128xf32>
    %cst_28 = arith.constant dense<0.000000e+00> : vector<1x128xf32>
    %68 = tpu.matmul %65, %1, %cst_28 {dimension_numbers = #tpu.dot_dimension_numbers<[1], [0], [0], [1], [0, 0, 1, 1], [], []>} : vector<1x32xf32>, vector<32x128xf32>, vector<1x128xf32> -> vector<1x128xf32>
    %69 = arith.addf %67, %68 : vector<1x128xf32>
    %70 = arith.negf %69 : vector<1x128xf32>
    %71 = math.exp %70 : vector<1x128xf32>
    %cst_29 = arith.constant 1.000000e+00 : f32
    %72 = vector.broadcast %cst_29 : f32 to vector<1x128xf32>
    %73 = arith.addf %72, %71 : vector<1x128xf32>
    %74 = arith.divf %72, %73 : vector<1x128xf32>
    %75 = vector.extract_strided_slice %74 {offsets = [0, 0], sizes = [1, 32], strides = [1, 1]} : vector<1x128xf32> to vector<1x32xf32>
    %76 = vector.extract_strided_slice %74 {offsets = [0, 32], sizes = [1, 32], strides = [1, 1]} : vector<1x128xf32> to vector<1x32xf32>
    %77 = vector.extract_strided_slice %74 {offsets = [0, 96], sizes = [1, 32], strides = [1, 1]} : vector<1x128xf32> to vector<1x32xf32>
    %78 = vector.extract_strided_slice %69 {offsets = [0, 64], sizes = [1, 32], strides = [1, 1]} : vector<1x128xf32> to vector<1x32xf32>
    %79 = math.tanh %78 : vector<1x32xf32>
    %80 = arith.mulf %76, %63 : vector<1x32xf32>
    %81 = arith.mulf %75, %79 : vector<1x32xf32>
    %82 = arith.addf %80, %81 : vector<1x32xf32>
    %83 = math.tanh %82 : vector<1x32xf32>
    %84 = arith.mulf %77, %83 : vector<1x32xf32>
    %c3_30 = arith.constant 3 : index
    %c0_31 = arith.constant 0 : index
    %85 = vector.load %arg11[%c3_30, %c0_31] : memref<8x32xf32, #tpu.memory_space<vmem>>, vector<1x32xf32>
    tpu.vector_store %arg11[%c3_30, %c0_31], %84 {strides = array<i32>} : memref<8x32xf32, #tpu.memory_space<vmem>>, vector<1x32xf32>,
    %c4 = arith.constant 4 : index
    %c0_32 = arith.constant 0 : index
    %86 = vector.load %arg10[%c4, %c0_32] : memref<8x128xf32, #tpu.memory_space<vmem>>, vector<1x128xf32>
    %cst_33 = arith.constant dense<0.000000e+00> : vector<1x128xf32>
    %87 = tpu.matmul %84, %1, %cst_33 {dimension_numbers = #tpu.dot_dimension_numbers<[1], [0], [0], [1], [0, 0, 1, 1], [], []>} : vector<1x32xf32>, vector<32x128xf32>, vector<1x128xf32> -> vector<1x128xf32>
    %88 = arith.addf %86, %87 : vector<1x128xf32>
    %89 = arith.negf %88 : vector<1x128xf32>
    %90 = math.exp %89 : vector<1x128xf32>
    %cst_34 = arith.constant 1.000000e+00 : f32
    %91 = vector.broadcast %cst_34 : f32 to vector<1x128xf32>
    %92 = arith.addf %91, %90 : vector<1x128xf32>
    %93 = arith.divf %91, %92 : vector<1x128xf32>
    %94 = vector.extract_strided_slice %93 {offsets = [0, 0], sizes = [1, 32], strides = [1, 1]} : vector<1x128xf32> to vector<1x32xf32>
    %95 = vector.extract_strided_slice %93 {offsets = [0, 32], sizes = [1, 32], strides = [1, 1]} : vector<1x128xf32> to vector<1x32xf32>
    %96 = vector.extract_strided_slice %93 {offsets = [0, 96], sizes = [1, 32], strides = [1, 1]} : vector<1x128xf32> to vector<1x32xf32>
    %97 = vector.extract_strided_slice %88 {offsets = [0, 64], sizes = [1, 32], strides = [1, 1]} : vector<1x128xf32> to vector<1x32xf32>
    %98 = math.tanh %97 : vector<1x32xf32>
    %99 = arith.mulf %95, %82 : vector<1x32xf32>
    %100 = arith.mulf %94, %98 : vector<1x32xf32>
    %101 = arith.addf %99, %100 : vector<1x32xf32>
    %102 = math.tanh %101 : vector<1x32xf32>
    %103 = arith.mulf %96, %102 : vector<1x32xf32>
    %c4_35 = arith.constant 4 : index
    %c0_36 = arith.constant 0 : index
    %104 = vector.load %arg11[%c4_35, %c0_36] : memref<8x32xf32, #tpu.memory_space<vmem>>, vector<1x32xf32>
    tpu.vector_store %arg11[%c4_35, %c0_36], %103 {strides = array<i32>} : memref<8x32xf32, #tpu.memory_space<vmem>>, vector<1x32xf32>,
    %c5 = arith.constant 5 : index
    %c0_37 = arith.constant 0 : index
    %105 = vector.load %arg10[%c5, %c0_37] : memref<8x128xf32, #tpu.memory_space<vmem>>, vector<1x128xf32>
    %cst_38 = arith.constant dense<0.000000e+00> : vector<1x128xf32>
    %106 = tpu.matmul %103, %1, %cst_38 {dimension_numbers = #tpu.dot_dimension_numbers<[1], [0], [0], [1], [0, 0, 1, 1], [], []>} : vector<1x32xf32>, vector<32x128xf32>, vector<1x128xf32> -> vector<1x128xf32>
    %107 = arith.addf %105, %106 : vector<1x128xf32>
    %108 = arith.negf %107 : vector<1x128xf32>
    %109 = math.exp %108 : vector<1x128xf32>
    %cst_39 = arith.constant 1.000000e+00 : f32
    %110 = vector.broadcast %cst_39 : f32 to vector<1x128xf32>
    %111 = arith.addf %110, %109 : vector<1x128xf32>
    %112 = arith.divf %110, %111 : vector<1x128xf32>
    %113 = vector.extract_strided_slice %112 {offsets = [0, 0], sizes = [1, 32], strides = [1, 1]} : vector<1x128xf32> to vector<1x32xf32>
    %114 = vector.extract_strided_slice %112 {offsets = [0, 32], sizes = [1, 32], strides = [1, 1]} : vector<1x128xf32> to vector<1x32xf32>
    %115 = vector.extract_strided_slice %112 {offsets = [0, 96], sizes = [1, 32], strides = [1, 1]} : vector<1x128xf32> to vector<1x32xf32>
    %116 = vector.extract_strided_slice %107 {offsets = [0, 64], sizes = [1, 32], strides = [1, 1]} : vector<1x128xf32> to vector<1x32xf32>
    %117 = math.tanh %116 : vector<1x32xf32>
    %118 = arith.mulf %114, %101 : vector<1x32xf32>
    %119 = arith.mulf %113, %117 : vector<1x32xf32>
    %120 = arith.addf %118, %119 : vector<1x32xf32>
    %121 = math.tanh %120 : vector<1x32xf32>
    %122 = arith.mulf %115, %121 : vector<1x32xf32>
    %c5_40 = arith.constant 5 : index
    %c0_41 = arith.constant 0 : index
    %123 = vector.load %arg11[%c5_40, %c0_41] : memref<8x32xf32, #tpu.memory_space<vmem>>, vector<1x32xf32>
    tpu.vector_store %arg11[%c5_40, %c0_41], %122 {strides = array<i32>} : memref<8x32xf32, #tpu.memory_space<vmem>>, vector<1x32xf32>,
    %c6 = arith.constant 6 : index
    %c0_42 = arith.constant 0 : index
    %124 = vector.load %arg10[%c6, %c0_42] : memref<8x128xf32, #tpu.memory_space<vmem>>, vector<1x128xf32>
    %cst_43 = arith.constant dense<0.000000e+00> : vector<1x128xf32>
    %125 = tpu.matmul %122, %1, %cst_43 {dimension_numbers = #tpu.dot_dimension_numbers<[1], [0], [0], [1], [0, 0, 1, 1], [], []>} : vector<1x32xf32>, vector<32x128xf32>, vector<1x128xf32> -> vector<1x128xf32>
    %126 = arith.addf %124, %125 : vector<1x128xf32>
    %127 = arith.negf %126 : vector<1x128xf32>
    %128 = math.exp %127 : vector<1x128xf32>
    %cst_44 = arith.constant 1.000000e+00 : f32
    %129 = vector.broadcast %cst_44 : f32 to vector<1x128xf32>
    %130 = arith.addf %129, %128 : vector<1x128xf32>
    %131 = arith.divf %129, %130 : vector<1x128xf32>
    %132 = vector.extract_strided_slice %131 {offsets = [0, 0], sizes = [1, 32], strides = [1, 1]} : vector<1x128xf32> to vector<1x32xf32>
    %133 = vector.extract_strided_slice %131 {offsets = [0, 32], sizes = [1, 32], strides = [1, 1]} : vector<1x128xf32> to vector<1x32xf32>
    %134 = vector.extract_strided_slice %131 {offsets = [0, 96], sizes = [1, 32], strides = [1, 1]} : vector<1x128xf32> to vector<1x32xf32>
    %135 = vector.extract_strided_slice %126 {offsets = [0, 64], sizes = [1, 32], strides = [1, 1]} : vector<1x128xf32> to vector<1x32xf32>
    %136 = math.tanh %135 : vector<1x32xf32>
    %137 = arith.mulf %133, %120 : vector<1x32xf32>
    %138 = arith.mulf %132, %136 : vector<1x32xf32>
    %139 = arith.addf %137, %138 : vector<1x32xf32>
    %140 = math.tanh %139 : vector<1x32xf32>
    %141 = arith.mulf %134, %140 : vector<1x32xf32>
    %c6_45 = arith.constant 6 : index
    %c0_46 = arith.constant 0 : index
    %142 = vector.load %arg11[%c6_45, %c0_46] : memref<8x32xf32, #tpu.memory_space<vmem>>, vector<1x32xf32>
    tpu.vector_store %arg11[%c6_45, %c0_46], %141 {strides = array<i32>} : memref<8x32xf32, #tpu.memory_space<vmem>>, vector<1x32xf32>,
    %c7 = arith.constant 7 : index
    %c0_47 = arith.constant 0 : index
    %143 = vector.load %arg10[%c7, %c0_47] : memref<8x128xf32, #tpu.memory_space<vmem>>, vector<1x128xf32>
    %cst_48 = arith.constant dense<0.000000e+00> : vector<1x128xf32>
    %144 = tpu.matmul %141, %1, %cst_48 {dimension_numbers = #tpu.dot_dimension_numbers<[1], [0], [0], [1], [0, 0, 1, 1], [], []>} : vector<1x32xf32>, vector<32x128xf32>, vector<1x128xf32> -> vector<1x128xf32>
    %145 = arith.addf %143, %144 : vector<1x128xf32>
    %146 = arith.negf %145 : vector<1x128xf32>
    %147 = math.exp %146 : vector<1x128xf32>
    %cst_49 = arith.constant 1.000000e+00 : f32
    %148 = vector.broadcast %cst_49 : f32 to vector<1x128xf32>
    %149 = arith.addf %148, %147 : vector<1x128xf32>
    %150 = arith.divf %148, %149 : vector<1x128xf32>
    %151 = vector.extract_strided_slice %150 {offsets = [0, 0], sizes = [1, 32], strides = [1, 1]} : vector<1x128xf32> to vector<1x32xf32>
    %152 = vector.extract_strided_slice %150 {offsets = [0, 32], sizes = [1, 32], strides = [1, 1]} : vector<1x128xf32> to vector<1x32xf32>
    %153 = vector.extract_strided_slice %150 {offsets = [0, 96], sizes = [1, 32], strides = [1, 1]} : vector<1x128xf32> to vector<1x32xf32>
    %154 = vector.extract_strided_slice %145 {offsets = [0, 64], sizes = [1, 32], strides = [1, 1]} : vector<1x128xf32> to vector<1x32xf32>
    %155 = math.tanh %154 : vector<1x32xf32>
    %156 = arith.mulf %152, %139 : vector<1x32xf32>
    %157 = arith.mulf %151, %155 : vector<1x32xf32>
    %158 = arith.addf %156, %157 : vector<1x32xf32>
    %159 = math.tanh %158 : vector<1x32xf32>
    %160 = arith.mulf %153, %159 : vector<1x32xf32>
    %c7_50 = arith.constant 7 : index
    %c0_51 = arith.constant 0 : index
    %161 = vector.load %arg11[%c7_50, %c0_51] : memref<8x32xf32, #tpu.memory_space<vmem>>, vector<1x32xf32>
    tpu.vector_store %arg11[%c7_50, %c0_51], %160 {strides = array<i32>} : memref<8x32xf32, #tpu.memory_space<vmem>>, vector<1x32xf32>,
    %c0_52 = arith.constant 0 : index
    %c0_53 = arith.constant 0 : index
    %162 = vector.load %arg4[%c0_52, %c0_53] : memref<32x128xf32, #tpu.memory_space<vmem>>, vector<32x128xf32>
    %c0_54 = arith.constant 0 : index
    %c0_55 = arith.constant 0 : index
    %163 = vector.load %arg5[%c0_54, %c0_55] : memref<32x128xf32, #tpu.memory_space<vmem>>, vector<32x128xf32>
    %c0_56 = arith.constant 0 : index
    %c0_57 = arith.constant 0 : index
    %164 = vector.load %arg6[%c0_56, %c0_57] : memref<1x128xf32, #tpu.memory_space<vmem>>, vector<1x128xf32>
    %c0_58 = arith.constant 0 : index
    %c0_59 = arith.constant 0 : index
    %165 = vector.load %arg11[%c0_58, %c0_59] : memref<8x32xf32, #tpu.memory_space<vmem>>, vector<8x32xf32>
    %cst_60 = arith.constant dense<0.000000e+00> : vector<8x128xf32>
    %166 = tpu.matmul %165, %162, %cst_60 {dimension_numbers = #tpu.dot_dimension_numbers<[1], [0], [0], [1], [0, 0, 1, 1], [], []>} : vector<8x32xf32>, vector<32x128xf32>, vector<8x128xf32> -> vector<8x128xf32>
    %167 = vector.broadcast %164 : vector<1x128xf32> to vector<8x128xf32>
    %168 = arith.addf %166, %167 : vector<8x128xf32>
    %c0_61 = arith.constant 0 : index
    %c0_62 = arith.constant 0 : index
    %169 = vector.load %arg10[%c0_61, %c0_62] : memref<8x128xf32, #tpu.memory_space<vmem>>, vector<8x128xf32>
    tpu.vector_store %arg10[%c0_61, %c0_62], %168 {strides = array<i32>} : memref<8x128xf32, #tpu.memory_space<vmem>>, vector<8x128xf32>,
    %cst_63 = arith.constant 0.000000e+00 : f32
    %170 = vector.broadcast %cst_63 : f32 to vector<1x32xf32>
    %cst_64 = arith.constant 0.000000e+00 : f32
    %171 = vector.broadcast %cst_64 : f32 to vector<1x32xf32>
    %c0_65 = arith.constant 0 : index
    %c0_66 = arith.constant 0 : index
    %172 = vector.load %arg10[%c0_65, %c0_66] : memref<8x128xf32, #tpu.memory_space<vmem>>, vector<1x128xf32>
    %cst_67 = arith.constant dense<0.000000e+00> : vector<1x128xf32>
    %173 = tpu.matmul %170, %163, %cst_67 {dimension_numbers = #tpu.dot_dimension_numbers<[1], [0], [0], [1], [0, 0, 1, 1], [], []>} : vector<1x32xf32>, vector<32x128xf32>, vector<1x128xf32> -> vector<1x128xf32>
    %174 = arith.addf %172, %173 : vector<1x128xf32>
    %175 = arith.negf %174 : vector<1x128xf32>
    %176 = math.exp %175 : vector<1x128xf32>
    %cst_68 = arith.constant 1.000000e+00 : f32
    %177 = vector.broadcast %cst_68 : f32 to vector<1x128xf32>
    %178 = arith.addf %177, %176 : vector<1x128xf32>
    %179 = arith.divf %177, %178 : vector<1x128xf32>
    %180 = vector.extract_strided_slice %179 {offsets = [0, 0], sizes = [1, 32], strides = [1, 1]} : vector<1x128xf32> to vector<1x32xf32>
    %181 = vector.extract_strided_slice %179 {offsets = [0, 32], sizes = [1, 32], strides = [1, 1]} : vector<1x128xf32> to vector<1x32xf32>
    %182 = vector.extract_strided_slice %179 {offsets = [0, 96], sizes = [1, 32], strides = [1, 1]} : vector<1x128xf32> to vector<1x32xf32>
    %183 = vector.extract_strided_slice %174 {offsets = [0, 64], sizes = [1, 32], strides = [1, 1]} : vector<1x128xf32> to vector<1x32xf32>
    %184 = math.tanh %183 : vector<1x32xf32>
    %185 = arith.mulf %181, %171 : vector<1x32xf32>
    %186 = arith.mulf %180, %184 : vector<1x32xf32>
    %187 = arith.addf %185, %186 : vector<1x32xf32>
    %188 = math.tanh %187 : vector<1x32xf32>
    %189 = arith.mulf %182, %188 : vector<1x32xf32>
    %c1_69 = arith.constant 1 : index
    %c0_70 = arith.constant 0 : index
    %190 = vector.load %arg10[%c1_69, %c0_70] : memref<8x128xf32, #tpu.memory_space<vmem>>, vector<1x128xf32>
    %cst_71 = arith.constant dense<0.000000e+00> : vector<1x128xf32>
    %191 = tpu.matmul %189, %163, %cst_71 {dimension_numbers = #tpu.dot_dimension_numbers<[1], [0], [0], [1], [0, 0, 1, 1], [], []>} : vector<1x32xf32>, vector<32x128xf32>, vector<1x128xf32> -> vector<1x128xf32>
    %192 = arith.addf %190, %191 : vector<1x128xf32>
    %193 = arith.negf %192 : vector<1x128xf32>
    %194 = math.exp %193 : vector<1x128xf32>
    %cst_72 = arith.constant 1.000000e+00 : f32
    %195 = vector.broadcast %cst_72 : f32 to vector<1x128xf32>
    %196 = arith.addf %195, %194 : vector<1x128xf32>
    %197 = arith.divf %195, %196 : vector<1x128xf32>
    %198 = vector.extract_strided_slice %197 {offsets = [0, 0], sizes = [1, 32], strides = [1, 1]} : vector<1x128xf32> to vector<1x32xf32>
    %199 = vector.extract_strided_slice %197 {offsets = [0, 32], sizes = [1, 32], strides = [1, 1]} : vector<1x128xf32> to vector<1x32xf32>
    %200 = vector.extract_strided_slice %197 {offsets = [0, 96], sizes = [1, 32], strides = [1, 1]} : vector<1x128xf32> to vector<1x32xf32>
    %201 = vector.extract_strided_slice %192 {offsets = [0, 64], sizes = [1, 32], strides = [1, 1]} : vector<1x128xf32> to vector<1x32xf32>
    %202 = math.tanh %201 : vector<1x32xf32>
    %203 = arith.mulf %199, %187 : vector<1x32xf32>
    %204 = arith.mulf %198, %202 : vector<1x32xf32>
    %205 = arith.addf %203, %204 : vector<1x32xf32>
    %206 = math.tanh %205 : vector<1x32xf32>
    %207 = arith.mulf %200, %206 : vector<1x32xf32>
    %c2_73 = arith.constant 2 : index
    %c0_74 = arith.constant 0 : index
    %208 = vector.load %arg10[%c2_73, %c0_74] : memref<8x128xf32, #tpu.memory_space<vmem>>, vector<1x128xf32>
    %cst_75 = arith.constant dense<0.000000e+00> : vector<1x128xf32>
    %209 = tpu.matmul %207, %163, %cst_75 {dimension_numbers = #tpu.dot_dimension_numbers<[1], [0], [0], [1], [0, 0, 1, 1], [], []>} : vector<1x32xf32>, vector<32x128xf32>, vector<1x128xf32> -> vector<1x128xf32>
    %210 = arith.addf %208, %209 : vector<1x128xf32>
    %211 = arith.negf %210 : vector<1x128xf32>
    %212 = math.exp %211 : vector<1x128xf32>
    %cst_76 = arith.constant 1.000000e+00 : f32
    %213 = vector.broadcast %cst_76 : f32 to vector<1x128xf32>
    %214 = arith.addf %213, %212 : vector<1x128xf32>
    %215 = arith.divf %213, %214 : vector<1x128xf32>
    %216 = vector.extract_strided_slice %215 {offsets = [0, 0], sizes = [1, 32], strides = [1, 1]} : vector<1x128xf32> to vector<1x32xf32>
    %217 = vector.extract_strided_slice %215 {offsets = [0, 32], sizes = [1, 32], strides = [1, 1]} : vector<1x128xf32> to vector<1x32xf32>
    %218 = vector.extract_strided_slice %215 {offsets = [0, 96], sizes = [1, 32], strides = [1, 1]} : vector<1x128xf32> to vector<1x32xf32>
    %219 = vector.extract_strided_slice %210 {offsets = [0, 64], sizes = [1, 32], strides = [1, 1]} : vector<1x128xf32> to vector<1x32xf32>
    %220 = math.tanh %219 : vector<1x32xf32>
    %221 = arith.mulf %217, %205 : vector<1x32xf32>
    %222 = arith.mulf %216, %220 : vector<1x32xf32>
    %223 = arith.addf %221, %222 : vector<1x32xf32>
    %224 = math.tanh %223 : vector<1x32xf32>
    %225 = arith.mulf %218, %224 : vector<1x32xf32>
    %c3_77 = arith.constant 3 : index
    %c0_78 = arith.constant 0 : index
    %226 = vector.load %arg10[%c3_77, %c0_78] : memref<8x128xf32, #tpu.memory_space<vmem>>, vector<1x128xf32>
    %cst_79 = arith.constant dense<0.000000e+00> : vector<1x128xf32>
    %227 = tpu.matmul %225, %163, %cst_79 {dimension_numbers = #tpu.dot_dimension_numbers<[1], [0], [0], [1], [0, 0, 1, 1], [], []>} : vector<1x32xf32>, vector<32x128xf32>, vector<1x128xf32> -> vector<1x128xf32>
    %228 = arith.addf %226, %227 : vector<1x128xf32>
    %229 = arith.negf %228 : vector<1x128xf32>
    %230 = math.exp %229 : vector<1x128xf32>
    %cst_80 = arith.constant 1.000000e+00 : f32
    %231 = vector.broadcast %cst_80 : f32 to vector<1x128xf32>
    %232 = arith.addf %231, %230 : vector<1x128xf32>
    %233 = arith.divf %231, %232 : vector<1x128xf32>
    %234 = vector.extract_strided_slice %233 {offsets = [0, 0], sizes = [1, 32], strides = [1, 1]} : vector<1x128xf32> to vector<1x32xf32>
    %235 = vector.extract_strided_slice %233 {offsets = [0, 32], sizes = [1, 32], strides = [1, 1]} : vector<1x128xf32> to vector<1x32xf32>
    %236 = vector.extract_strided_slice %233 {offsets = [0, 96], sizes = [1, 32], strides = [1, 1]} : vector<1x128xf32> to vector<1x32xf32>
    %237 = vector.extract_strided_slice %228 {offsets = [0, 64], sizes = [1, 32], strides = [1, 1]} : vector<1x128xf32> to vector<1x32xf32>
    %238 = math.tanh %237 : vector<1x32xf32>
    %239 = arith.mulf %235, %223 : vector<1x32xf32>
    %240 = arith.mulf %234, %238 : vector<1x32xf32>
    %241 = arith.addf %239, %240 : vector<1x32xf32>
    %242 = math.tanh %241 : vector<1x32xf32>
    %243 = arith.mulf %236, %242 : vector<1x32xf32>
    %c4_81 = arith.constant 4 : index
    %c0_82 = arith.constant 0 : index
    %244 = vector.load %arg10[%c4_81, %c0_82] : memref<8x128xf32, #tpu.memory_space<vmem>>, vector<1x128xf32>
    %cst_83 = arith.constant dense<0.000000e+00> : vector<1x128xf32>
    %245 = tpu.matmul %243, %163, %cst_83 {dimension_numbers = #tpu.dot_dimension_numbers<[1], [0], [0], [1], [0, 0, 1, 1], [], []>} : vector<1x32xf32>, vector<32x128xf32>, vector<1x128xf32> -> vector<1x128xf32>
    %246 = arith.addf %244, %245 : vector<1x128xf32>
    %247 = arith.negf %246 : vector<1x128xf32>
    %248 = math.exp %247 : vector<1x128xf32>
    %cst_84 = arith.constant 1.000000e+00 : f32
    %249 = vector.broadcast %cst_84 : f32 to vector<1x128xf32>
    %250 = arith.addf %249, %248 : vector<1x128xf32>
    %251 = arith.divf %249, %250 : vector<1x128xf32>
    %252 = vector.extract_strided_slice %251 {offsets = [0, 0], sizes = [1, 32], strides = [1, 1]} : vector<1x128xf32> to vector<1x32xf32>
    %253 = vector.extract_strided_slice %251 {offsets = [0, 32], sizes = [1, 32], strides = [1, 1]} : vector<1x128xf32> to vector<1x32xf32>
    %254 = vector.extract_strided_slice %251 {offsets = [0, 96], sizes = [1, 32], strides = [1, 1]} : vector<1x128xf32> to vector<1x32xf32>
    %255 = vector.extract_strided_slice %246 {offsets = [0, 64], sizes = [1, 32], strides = [1, 1]} : vector<1x128xf32> to vector<1x32xf32>
    %256 = math.tanh %255 : vector<1x32xf32>
    %257 = arith.mulf %253, %241 : vector<1x32xf32>
    %258 = arith.mulf %252, %256 : vector<1x32xf32>
    %259 = arith.addf %257, %258 : vector<1x32xf32>
    %260 = math.tanh %259 : vector<1x32xf32>
    %261 = arith.mulf %254, %260 : vector<1x32xf32>
    %c5_85 = arith.constant 5 : index
    %c0_86 = arith.constant 0 : index
    %262 = vector.load %arg10[%c5_85, %c0_86] : memref<8x128xf32, #tpu.memory_space<vmem>>, vector<1x128xf32>
    %cst_87 = arith.constant dense<0.000000e+00> : vector<1x128xf32>
    %263 = tpu.matmul %261, %163, %cst_87 {dimension_numbers = #tpu.dot_dimension_numbers<[1], [0], [0], [1], [0, 0, 1, 1], [], []>} : vector<1x32xf32>, vector<32x128xf32>, vector<1x128xf32> -> vector<1x128xf32>
    %264 = arith.addf %262, %263 : vector<1x128xf32>
    %265 = arith.negf %264 : vector<1x128xf32>
    %266 = math.exp %265 : vector<1x128xf32>
    %cst_88 = arith.constant 1.000000e+00 : f32
    %267 = vector.broadcast %cst_88 : f32 to vector<1x128xf32>
    %268 = arith.addf %267, %266 : vector<1x128xf32>
    %269 = arith.divf %267, %268 : vector<1x128xf32>
    %270 = vector.extract_strided_slice %269 {offsets = [0, 0], sizes = [1, 32], strides = [1, 1]} : vector<1x128xf32> to vector<1x32xf32>
    %271 = vector.extract_strided_slice %269 {offsets = [0, 32], sizes = [1, 32], strides = [1, 1]} : vector<1x128xf32> to vector<1x32xf32>
    %272 = vector.extract_strided_slice %269 {offsets = [0, 96], sizes = [1, 32], strides = [1, 1]} : vector<1x128xf32> to vector<1x32xf32>
    %273 = vector.extract_strided_slice %264 {offsets = [0, 64], sizes = [1, 32], strides = [1, 1]} : vector<1x128xf32> to vector<1x32xf32>
    %274 = math.tanh %273 : vector<1x32xf32>
    %275 = arith.mulf %271, %259 : vector<1x32xf32>
    %276 = arith.mulf %270, %274 : vector<1x32xf32>
    %277 = arith.addf %275, %276 : vector<1x32xf32>
    %278 = math.tanh %277 : vector<1x32xf32>
    %279 = arith.mulf %272, %278 : vector<1x32xf32>
    %c6_89 = arith.constant 6 : index
    %c0_90 = arith.constant 0 : index
    %280 = vector.load %arg10[%c6_89, %c0_90] : memref<8x128xf32, #tpu.memory_space<vmem>>, vector<1x128xf32>
    %cst_91 = arith.constant dense<0.000000e+00> : vector<1x128xf32>
    %281 = tpu.matmul %279, %163, %cst_91 {dimension_numbers = #tpu.dot_dimension_numbers<[1], [0], [0], [1], [0, 0, 1, 1], [], []>} : vector<1x32xf32>, vector<32x128xf32>, vector<1x128xf32> -> vector<1x128xf32>
    %282 = arith.addf %280, %281 : vector<1x128xf32>
    %283 = arith.negf %282 : vector<1x128xf32>
    %284 = math.exp %283 : vector<1x128xf32>
    %cst_92 = arith.constant 1.000000e+00 : f32
    %285 = vector.broadcast %cst_92 : f32 to vector<1x128xf32>
    %286 = arith.addf %285, %284 : vector<1x128xf32>
    %287 = arith.divf %285, %286 : vector<1x128xf32>
    %288 = vector.extract_strided_slice %287 {offsets = [0, 0], sizes = [1, 32], strides = [1, 1]} : vector<1x128xf32> to vector<1x32xf32>
    %289 = vector.extract_strided_slice %287 {offsets = [0, 32], sizes = [1, 32], strides = [1, 1]} : vector<1x128xf32> to vector<1x32xf32>
    %290 = vector.extract_strided_slice %287 {offsets = [0, 96], sizes = [1, 32], strides = [1, 1]} : vector<1x128xf32> to vector<1x32xf32>
    %291 = vector.extract_strided_slice %282 {offsets = [0, 64], sizes = [1, 32], strides = [1, 1]} : vector<1x128xf32> to vector<1x32xf32>
    %292 = math.tanh %291 : vector<1x32xf32>
    %293 = arith.mulf %289, %277 : vector<1x32xf32>
    %294 = arith.mulf %288, %292 : vector<1x32xf32>
    %295 = arith.addf %293, %294 : vector<1x32xf32>
    %296 = math.tanh %295 : vector<1x32xf32>
    %297 = arith.mulf %290, %296 : vector<1x32xf32>
    %c7_93 = arith.constant 7 : index
    %c0_94 = arith.constant 0 : index
    %298 = vector.load %arg10[%c7_93, %c0_94] : memref<8x128xf32, #tpu.memory_space<vmem>>, vector<1x128xf32>
    %cst_95 = arith.constant dense<0.000000e+00> : vector<1x128xf32>
    %299 = tpu.matmul %297, %163, %cst_95 {dimension_numbers = #tpu.dot_dimension_numbers<[1], [0], [0], [1], [0, 0, 1, 1], [], []>} : vector<1x32xf32>, vector<32x128xf32>, vector<1x128xf32> -> vector<1x128xf32>
    %300 = arith.addf %298, %299 : vector<1x128xf32>
    %301 = arith.negf %300 : vector<1x128xf32>
    %302 = math.exp %301 : vector<1x128xf32>
    %cst_96 = arith.constant 1.000000e+00 : f32
    %303 = vector.broadcast %cst_96 : f32 to vector<1x128xf32>
    %304 = arith.addf %303, %302 : vector<1x128xf32>
    %305 = arith.divf %303, %304 : vector<1x128xf32>
    %306 = vector.extract_strided_slice %305 {offsets = [0, 0], sizes = [1, 32], strides = [1, 1]} : vector<1x128xf32> to vector<1x32xf32>
    %307 = vector.extract_strided_slice %305 {offsets = [0, 32], sizes = [1, 32], strides = [1, 1]} : vector<1x128xf32> to vector<1x32xf32>
    %308 = vector.extract_strided_slice %305 {offsets = [0, 96], sizes = [1, 32], strides = [1, 1]} : vector<1x128xf32> to vector<1x32xf32>
    %309 = vector.extract_strided_slice %300 {offsets = [0, 64], sizes = [1, 32], strides = [1, 1]} : vector<1x128xf32> to vector<1x32xf32>
    %310 = math.tanh %309 : vector<1x32xf32>
    %311 = arith.mulf %307, %295 : vector<1x32xf32>
    %312 = arith.mulf %306, %310 : vector<1x32xf32>
    %313 = arith.addf %311, %312 : vector<1x32xf32>
    %314 = math.tanh %313 : vector<1x32xf32>
    %315 = arith.mulf %308, %314 : vector<1x32xf32>
    %c0_97 = arith.constant 0 : index
    %c0_98 = arith.constant 0 : index
    %316 = vector.load %arg7[%c0_97, %c0_98] : memref<32x4xf32, #tpu.memory_space<vmem>>, vector<32x4xf32>
    %c0_99 = arith.constant 0 : index
    %c0_100 = arith.constant 0 : index
    %317 = vector.load %arg8[%c0_99, %c0_100] : memref<1x4xf32, #tpu.memory_space<vmem>>, vector<1x4xf32>
    %cst_101 = arith.constant dense<0.000000e+00> : vector<1x4xf32>
    %318 = tpu.matmul %315, %316, %cst_101 {dimension_numbers = #tpu.dot_dimension_numbers<[1], [0], [0], [1], [0, 0, 1, 1], [], []>} : vector<1x32xf32>, vector<32x4xf32>, vector<1x4xf32> -> vector<1x4xf32>
    %319 = arith.addf %318, %317 : vector<1x4xf32>
    %320 = arith.negf %319 : vector<1x4xf32>
    %321 = math.exp %320 : vector<1x4xf32>
    %cst_102 = arith.constant 1.000000e+00 : f32
    %322 = vector.broadcast %cst_102 : f32 to vector<1x4xf32>
    %323 = arith.addf %322, %321 : vector<1x4xf32>
    %324 = arith.divf %322, %323 : vector<1x4xf32>
    %c0_103 = arith.constant 0 : index
    %c0_104 = arith.constant 0 : index
    %325 = vector.load %arg9[%c0_103, %c0_104] : memref<1x4xf32, #tpu.memory_space<vmem>>, vector<1x4xf32>
    tpu.vector_store %arg9[%c0_103, %c0_104], %324 {strides = array<i32>} : memref<1x4xf32, #tpu.memory_space<vmem>>, vector<1x4xf32>,
    return
  }
}

</mosaic_0001>

<bundles_post_ra>
// kernel: _lambda_.1
= control target key start
LH: loop header
LB: loop body
LE: loop exit
PB: predicated region body
PF: predicated region fallthrough
CT: control target
= control target key end

     0   :  { %14 = vsyncpa [#allocation5], 0  ;;  %s2972_s0 = inlined_call_operand.vmem [shape: f32[8,4], index: 0, kind: input, shape index: {}]   ;;  %s2973_s1 = inlined_call_operand.vmem [shape: f32[4,128], index: 1, kind: input, shape index: {}]   ;;  %s2974_s2 = inlined_call_operand.hbm [shape: f32[32,128], index: 2, kind: input, shape index: {}]   ;;  %s2975_s3 = inlined_call_operand.vmem [shape: f32[1,128], index: 3, kind: input, shape index: {}]   ;;  %s2976_s4 = inlined_call_operand.hbm [shape: f32[32,128], index: 4, kind: input, shape index: {}]   ;;  %s2977_s5 = inlined_call_operand.hbm [shape: f32[32,128], index: 5, kind: input, shape index: {}]   ;;  %s2978_s6 = inlined_call_operand.vmem [shape: f32[1,128], index: 6, kind: input, shape index: {}]   ;;  %s2979_s7 = inlined_call_operand.hbm [shape: f32[32,4], index: 7, kind: input, shape index: {}]   ;;  %s2980_s8 = inlined_call_operand.vmem [shape: f32[1,4], index: 8, kind: input, shape index: {}]   ;;  %s2981_s9 = inlined_call_operand.hbm [shape: f32[1,4], index: 9, kind: output, shape index: {}]  }
   0x1   :  { %15 = vsyncpa [#allocation8], 0 }
   0x2   :  { %16 = vsyncpa [#allocation11], 0 }
   0x3   :  { %17 = vsyncpa [#allocation6], 0  ;;  %s2588_s30 = smov [#allocation7]   ;;  %s2589_s11 = smov [#allocation4]  }
   0x4   :  { %s41_s10 = sshll.u32 %s2588_s30, 4  ;;  %s27_s12 = sshll.u32 %s2589_s11, 4  ;;  %s42_s10 = int_to_ptr.vmem [resolvable:$true] %s41_s10  ;;  %s28_s12 = int_to_ptr.vmem [resolvable:$true] %s27_s12 }
   0x5   :  { %s2488_s13 = scalar_lea.vmem %s42_s10, 512  ;;  %p2493_p1 = scmp.lt.s32.totalorder %s42_s10, %s42_s10 }
   0x6   :  { %p2489_p0 = scmp.ne.s32.totalorder %s42_s10, %s2488_s13  ;;  %p2494_p2 = scmp.lt.s32.totalorder %s2488_s13, %s2488_s13 }
   0x8   :  { %p2495_p3 = por %p2494_p2, %p2493_p1 }
   0xa   :  { %p2496_p4 = pnand %p2495_p3, %p2489_p0 }
   0xc   :  { %2499 = shalt.err (!%p2496_p4)
}
   0xd   :  { %s2590_s14 = smov 128   ;;  %s2591_s15 = smov 8  }
   0xe   :  { %47 = dma.hbm_to_vmem [thread:$0]  %s2976_s4, 512, %s42_s10, [#allocation8], %s2590_s14, %s2590_s14, %s2591_s15  }
   0xf   :  { %s2508_s18 = scalar_lea.vmem %s28_s12, 512  ;;  %p2513_p6 = scmp.lt.s32.totalorder %s28_s12, %s28_s12 }
  0x10   :  { %p2509_p5 = scmp.ne.s32.totalorder %s28_s12, %s2508_s18  ;;  %p2514_p7 = scmp.lt.s32.totalorder %s2508_s18, %s2508_s18 }
  0x12   :  { %p2515_p8 = por %p2514_p7, %p2513_p6 }
  0x14   :  { %p2516_p9 = pnand %p2515_p8, %p2509_p5 }
  0x16   :  { %2519 = shalt.err (!%p2516_p9)
}
  0x17   :  { %33 = dma.hbm_to_vmem [thread:$0]  %s2974_s2, 512, %s28_s12, [#allocation5], %s2590_s14, %s2590_s14, %s2591_s15  }
  0x18   :  { %s2592_s21 = smov [#allocation9]   ;;  %s2593_s23 = smov [#allocation10]  }
  0x19   :  { %s53_s22 = sshll.u32 %s2592_s21, 4  ;;  %s67_s24 = sshll.u32 %s2593_s23, 4  ;;  %s54_s22 = int_to_ptr.vmem [resolvable:$true] %s53_s22  ;;  %s68_s24 = int_to_ptr.vmem [resolvable:$true] %s67_s24 }
  0x1a   :  { %s2528_s4 = scalar_lea.vmem %s54_s22, 512  ;;  %p2533_p11 = scmp.lt.s32.totalorder %s54_s22, %s54_s22 }
  0x1b   :  { %p2529_p10 = scmp.ne.s32.totalorder %s54_s22, %s2528_s4  ;;  %p2534_p12 = scmp.lt.s32.totalorder %s2528_s4, %s2528_s4 }
  0x1d   :  { %p2535_p13 = por %p2534_p12, %p2533_p11 }
  0x1f   :  { %p2536_p0 = pnand %p2535_p13, %p2529_p10 }
  0x21   :  { %2539 = shalt.err (!%p2536_p0)
}
  0x22   :  { %59 = dma.hbm_to_vmem [thread:$0]  %s2977_s5, 512, %s54_s22, [#allocation8], %s2590_s14, %s2590_s14, %s2591_s15  }
  0x23   :  { %s2548_s2 = scalar_lea.vmem %s68_s24, 512  ;;  %p2553_p2 = scmp.lt.s32.totalorder %s68_s24, %s68_s24 }
  0x24   :  { %p2549_p1 = scmp.ne.s32.totalorder %s68_s24, %s2548_s2  ;;  %p2554_p3 = scmp.lt.s32.totalorder %s2548_s2, %s2548_s2 }
  0x26   :  { %p2555_p4 = por %p2554_p3, %p2553_p2 }
  0x28   :  { %p2556_p5 = pnand %p2555_p4, %p2549_p1 }
  0x2a   :  { %2559 = shalt.err (!%p2556_p5)
}
  0x2b   :  { %73 = dma.hbm_to_vmem [thread:$0]  %s2979_s7, 512, %s68_s24, [#allocation11], %s2590_s14, %s2590_s14, %s2591_s15  }
  0x2c   :  { %2580 = dma.done.wait [#allocation5], 512  }
  0x2d   :  { %2581 = vsyncadd [#allocation5], 4294966784 }
  0x2e   :  { %2582 = dma.done.wait [#allocation8], 1024  }
  0x2f   :  { %2583 = vsyncadd [#allocation8], 4294966272 }
  0x30   :  { %2584 = dma.done.wait [#allocation11], 512  }
  0x31   :  { %2585 = vsyncadd [#allocation11], 4294966784  ;;  %v2594_v0 = vmov 0.0   ;;  %vm2595_vm0 = vmmov 0   ;;  %vm105_vm1 = vcmask 1043456   ;;  %vm101_vm2 = vcmask 31744  }
  0x32   :  { %2134 = vmatprep.subr.mxu0 %v2594_v0  ;;  %2136 = vmatprep.mubr.msk.f32.mxu0 %vm2595_vm0, %v2594_v0  ;;  %v88_v1 = vld [vmem:[%s2973_s1] sm:$0xf]  ;;  %v2685_v3 = vld [vmem:[#allocation4 + $0x18] sm:$0xff]  ;;  %v2691_v5 = vld [vmem:[#allocation4 + $0x8] sm:$0xff]  ;;  %s2596_s10 = smov 64   ;;  %vm284_vm3 = vcmask 253952  }
  0x33   :  { %2139 = vmatprep.subr.mxu1 %v2594_v0  ;;  %2147 = vmatprep.mubr.msk.f32.mxu1 %vm2595_vm0, %v2594_v0  ;;  %v94_v2 = vld [vmem:[%s2972_s0] sm:$0xff]  ;;  %v2696_v6 = vld [vmem:[#allocation4] sm:$0xff]  ;;  %vm181_vm4 = vcmask 261120   ;;  %s2598_s14 = smov [#allocation12]   ;;  %vm1986_vm5 = vcmask 24576  }
  0x34   :  { %2135 = vmatpush3.msk.msra.mxu0 %vm105_vm1, %v88_v1  ;;  %2140 = vmatpush3.msra.mxu1 %v2685_v3  ;;  %v2688_v4 = vld [vmem:[#allocation4 + $0x10] sm:$0xff]  ;;  %s1994_s15 = sshll.u32 %s2598_s14, 4  ;;  %s1995_s15 = int_to_ptr.vmem [resolvable:$true] %s1994_s15 }
  0x35   :  { %2137 = vmatmul.mubr.msk.f32.vlgmr.msra.gmra.mxu0 %vm101_vm2, %v94_v2  ;;  %2141 = vmatprep.subr.mxu1 %v2594_v0  ;;  %v2005_v7 = vld [vmem:[%s2975_s3] ss:$0 sm:$0xff]  ;;  %s2597_s3 = smov 32   ;;  %s2560_s16 = scalar_lea.vmem %s1995_s15, 16 }
  0x36   :  { %2142 = vmatpush3.msra.mxu1 %v2688_v4  ;;  %2150 = vmatprep.subr.mxu0 %v2594_v0  ;;  %p2561_p6 = scmp.ne.s32.totalorder %s1995_s15, %s2560_s16  ;;  %s2564_s17 = scalar_lea.vmem %s1995_s15, 32 }
  0x37   :  { %2143 = vmatprep.subr.mxu1 %v2594_v0  ;;  %2151 = vmatpush3.msra.mxu0 %v2685_v3  ;;  %p2565_p7 = scmp.lt.s32.totalorder %s1995_s15, %s1995_s15  ;;  %p2566_p8 = scmp.lt.s32.totalorder %s2564_s17, %s2560_s16 }
  0x38   :  { %2144 = vmatpush3.msra.mxu1 %v2691_v5  ;;  %2152 = vmatprep.subr.mxu0 %v2594_v0 }
  0x39   :  { %2145 = vmatprep.subr.mxu1 %v2594_v0  ;;  %2153 = vmatpush3.msra.mxu0 %v2688_v4  ;;  %p2567_p9 = por %p2566_p8, %p2565_p7 }
  0x3a   :  { %2146 = vmatpush3.msra.mxu1 %v2696_v6  ;;  %2154 = vmatprep.subr.mxu0 %v2594_v0 }
  0x3b   :  { %2148 = vmatmul.mubr.f32.vlgmr.msra.gmra.mxu1 %v2594_v0  ;;  %2155 = vmatpush3.msra.mxu0 %v2691_v5  ;;  %p2568_p10 = pnand %p2567_p9, %p2561_p6 }
  0x3c   :  { %2156 = vmatprep.subr.mxu0 %v2594_v0  ;;  %2158 = vmatprep.mubr.msk.f32.mxu0 %vm2595_vm0, %v2594_v0 }
  0x3d   :  { %2157 = vmatpush3.msra.mxu0 %v2696_v6  ;;  %2161 = vmatprep.subr.mxu1 %v2594_v0 }
  0x3e   :  { %2162 = vmatpush3.msra.mxu1 %v2685_v3  ;;  %2169 = vmatprep.mubr.msk.f32.mxu1 %vm2595_vm0, %v2594_v0 }
  0x3f   :  { %2163 = vmatprep.subr.mxu1 %v2594_v0  ;;  %2172 = vmatprep.subr.mxu0 %v2594_v0 }
  0x40   :  { %2164 = vmatpush3.msra.mxu1 %v2688_v4 }
  0x41   :  { %2165 = vmatprep.subr.mxu1 %v2594_v0 }
  0x42   :  { %2166 = vmatpush3.msra.mxu1 %v2691_v5 }
  0x43   :  { %2167 = vmatprep.subr.mxu1 %v2594_v0 }
  0x44   :  { %2168 = vmatpush3.msra.mxu1 %v2696_v6 }
  0x45   :  { %2183 = vmatprep.subr.mxu1 %v2594_v0 }
  0xf5   :  { %v175_v8 = vpop.f32.mrf.mxu0 }
  0xf6   :  { %v176_v9 = vadd.f32 %v2005_v7, %v175_v8 }
  0xf7   :  { %v2138_v10 = vpop.f32.mrf.mxu0 }
  0xf8   :  { %179 = vst [vmem:[#allocation2] sm:$0xff] %v176_v9 }
  0xfb   :  { %v251_v11 = vpop.f32.mrf.mxu1 }
  0xfd   :  { %v2149_v12 = vpop.f32.mrf.mxu1 }
  0xff   :  { %v180_v13 = vld [vmem:[#allocation2] sm:$0x1]  ;;  %v286_v29 = vld [vmem:[#allocation2 + $0x1] sm:$0x1]  ;;  %v389_v47 = vld [vmem:[#allocation2 + $0x2] sm:$0x1] }
 0x100   :  { %v255_v14 = vadd.f32 %v251_v11, %v180_v13  ;;  %v492_v2 = vld [vmem:[#allocation2 + $0x3] sm:$0x1] }
 0x102   :  { %2348 = vtanh.f32 %v255_v14  ;;  %v2008_v16 = vmul.f32 -1.442695, %v255_v14 }
 0x104   :  { %2350 = vpow2.f32 %v2008_v16 }
 0x10f   :  { %v2349_v15 = vpop.eup %2348 }
 0x110   :  { %265 = vrot.lane.b32.xlu0 %v2349_v15, %s2596_s10 }
 0x111   :  { %v2351_v17 = vpop.eup %2350 }
 0x112   :  { %v259_v18 = vadd.f32 1.0, %v2351_v17 }
 0x114   :  { %2352 = vrcp.f32 %v259_v18 }
 0x121   :  { %v2353_v19 = vpop.eup %2352 }
 0x122   :  { %v263_v22 = vmul.f32 0.0, %v2353_v19 }
 0x182   :  { %v266_v20 = vpop.permute.xlu0 %265 }
 0x183   :  { %v268_v21 = vmul.f32 %v2353_v19, %v266_v20 }
 0x185   :  { %270 = vrot.lane.b32.xlu0 %v268_v21, %s2597_s3 }
 0x1f7   :  { %v271_v23 = vpop.permute.xlu0 %270 }
 0x1f8   :  { %v273_v24 = vadd.f32 %v271_v23, %v263_v22 }
 0x1fa   :  { %2354 = vtanh.f32 %v273_v24 }
 0x207   :  { %v2355_v25 = vpop.eup %2354 }
 0x208   :  { %276 = vrot.lane.b32.xlu1 %v2355_v25, %s2596_s10 }
 0x27a   :  { %v277_v26 = vpop.permute.xlu1 %276 }
 0x27b   :  { %v279_v27 = vmul.f32 %v2353_v19, %v277_v26 }
 0x27d   :  { %281 = vrot.lane.b32.xlu1 %v279_v27, %s2597_s3 }
 0x2ef   :  { %v282_v28 = vpop.permute.xlu1 %281 }
 0x2f0   :  { %285 = vst.msk [vmem:[#allocation3] sm:$0x1] %vm284_vm3, %v282_v28  ;;  %2159 = vmatmul.mubr.msk.f32.vlgmr.msra.gmra.mxu0 %vm181_vm4, %v282_v28 }
 0x2f1   :  { %2173 = vmatpush3.msra.mxu0 %v2685_v3  ;;  %2180 = vmatprep.mubr.msk.f32.mxu0 %vm2595_vm0, %v2594_v0 }
 0x2f2   :  { %2174 = vmatprep.subr.mxu0 %v2594_v0 }
 0x2f3   :  { %2175 = vmatpush3.msra.mxu0 %v2688_v4 }
 0x2f4   :  { %2176 = vmatprep.subr.mxu0 %v2594_v0 }
 0x2f5   :  { %2177 = vmatpush3.msra.mxu0 %v2691_v5 }
 0x2f6   :  { %2178 = vmatprep.subr.mxu0 %v2594_v0 }
 0x2f7   :  { %2179 = vmatpush3.msra.mxu0 %v2696_v6 }
 0x2f8   :  { %2194 = vmatprep.subr.mxu0 %v2594_v0 }
 0x3b0   :  { %v355_v30 = vpop.f32.mrf.mxu0 }
 0x3b1   :  { %v359_v31 = vadd.f32 %v355_v30, %v286_v29 }
 0x3b2   :  { %v2160_v32 = vpop.f32.mrf.mxu0 }
 0x3b3   :  { %2356 = vtanh.f32 %v359_v31  ;;  %v2010_v34 = vmul.f32 -1.442695, %v359_v31 }
 0x3b5   :  { %2358 = vpow2.f32 %v2010_v34 }
 0x3c0   :  { %v2357_v33 = vpop.eup %2356 }
 0x3c1   :  { %369 = vrot.lane.b32.xlu0 %v2357_v33, %s2596_s10 }
 0x3c2   :  { %v2359_v35 = vpop.eup %2358 }
 0x3c3   :  { %v363_v36 = vadd.f32 1.0, %v2359_v35 }
 0x3c5   :  { %2360 = vrcp.f32 %v363_v36 }
 0x3d2   :  { %v2361_v37 = vpop.eup %2360 }
 0x3d3   :  { %v367_v40 = vmul.f32 %v2361_v37, %v273_v24  ;;  %v595_v24 = vld [vmem:[#allocation2 + $0x4] sm:$0x1] }
 0x433   :  { %v370_v38 = vpop.permute.xlu0 %369 }
 0x434   :  { %v372_v39 = vmul.f32 %v2361_v37, %v370_v38 }
 0x436   :  { %374 = vrot.lane.b32.xlu1 %v372_v39, %s2597_s3 }
 0x4a8   :  { %v375_v41 = vpop.permute.xlu1 %374 }
 0x4a9   :  { %v377_v42 = vadd.f32 %v375_v41, %v367_v40 }
 0x4ab   :  { %2362 = vtanh.f32 %v377_v42 }
 0x4b8   :  { %v2363_v43 = vpop.eup %2362 }
 0x4b9   :  { %380 = vrot.lane.b32.xlu0 %v2363_v43, %s2596_s10 }
 0x52b   :  { %v381_v44 = vpop.permute.xlu0 %380 }
 0x52c   :  { %v383_v45 = vmul.f32 %v2361_v37, %v381_v44 }
 0x52e   :  { %385 = vrot.lane.b32.xlu1 %v383_v45, %s2597_s3 }
 0x5a0   :  { %v386_v46 = vpop.permute.xlu1 %385 }
 0x5a1   :  { %388 = vst.msk [vmem:[#allocation3 + $0x1] sm:$0x1] %vm284_vm3, %v386_v46  ;;  %2170 = vmatmul.mubr.msk.f32.vlgmr.msra.gmra.mxu1 %vm181_vm4, %v386_v46 }
 0x5a2   :  { %2184 = vmatpush3.msra.mxu1 %v2685_v3  ;;  %2191 = vmatprep.mubr.msk.f32.mxu1 %vm2595_vm0, %v2594_v0 }
 0x5a3   :  { %2185 = vmatprep.subr.mxu1 %v2594_v0 }
 0x5a4   :  { %2186 = vmatpush3.msra.mxu1 %v2688_v4 }
 0x5a5   :  { %2187 = vmatprep.subr.mxu1 %v2594_v0 }
 0x5a6   :  { %2188 = vmatpush3.msra.mxu1 %v2691_v5 }
 0x5a7   :  { %2189 = vmatprep.subr.mxu1 %v2594_v0 }
 0x5a8   :  { %2190 = vmatpush3.msra.mxu1 %v2696_v6 }
 0x5a9   :  { %2205 = vmatprep.subr.mxu1 %v2594_v0 }
 0x661   :  { %v458_v48 = vpop.f32.mrf.mxu1 }
 0x662   :  { %v462_v49 = vadd.f32 %v458_v48, %v389_v47 }
 0x663   :  { %v2171_v50 = vpop.f32.mrf.mxu1 }
 0x664   :  { %2364 = vtanh.f32 %v462_v49  ;;  %v2012_v52 = vmul.f32 -1.442695, %v462_v49 }
 0x666   :  { %2366 = vpow2.f32 %v2012_v52 }
 0x671   :  { %v2365_v51 = vpop.eup %2364 }
 0x672   :  { %472 = vrot.lane.b32.xlu0 %v2365_v51, %s2596_s10 }
 0x673   :  { %v2367_v53 = vpop.eup %2366 }
 0x674   :  { %v466_v54 = vadd.f32 1.0, %v2367_v53 }
 0x676   :  { %2368 = vrcp.f32 %v466_v54 }
 0x683   :  { %v2369_v55 = vpop.eup %2368 }
 0x684   :  { %v470_v58 = vmul.f32 %v2369_v55, %v377_v42  ;;  %v698_v42 = vld [vmem:[#allocation2 + $0x5] sm:$0x1] }
 0x6e4   :  { %v473_v56 = vpop.permute.xlu0 %472 }
 0x6e5   :  { %v475_v57 = vmul.f32 %v2369_v55, %v473_v56  ;;  %v801_v56 = vld [vmem:[#allocation2 + $0x6] sm:$0x1] }
 0x6e7   :  { %477 = vrot.lane.b32.xlu1 %v475_v57, %s2597_s3 }
 0x759   :  { %v478_v59 = vpop.permute.xlu1 %477 }
 0x75a   :  { %v480_v60 = vadd.f32 %v478_v59, %v470_v58 }
 0x75c   :  { %2370 = vtanh.f32 %v480_v60 }
 0x769   :  { %v2371_v61 = vpop.eup %2370 }
 0x76a   :  { %483 = vrot.lane.b32.xlu0 %v2371_v61, %s2596_s10 }
 0x7dc   :  { %v484_v62 = vpop.permute.xlu0 %483 }
 0x7dd   :  { %v486_v63 = vmul.f32 %v2369_v55, %v484_v62 }
 0x7df   :  { %488 = vrot.lane.b32.xlu1 %v486_v63, %s2597_s3 }
 0x851   :  { %v489_v1 = vpop.permute.xlu1 %488 }
 0x852   :  { %491 = vst.msk [vmem:[#allocation3 + $0x2] sm:$0x1] %vm284_vm3, %v489_v1  ;;  %2181 = vmatmul.mubr.msk.f32.vlgmr.msra.gmra.mxu0 %vm181_vm4, %v489_v1 }
 0x853   :  { %2195 = vmatpush3.msra.mxu0 %v2685_v3  ;;  %2202 = vmatprep.mubr.msk.f32.mxu0 %vm2595_vm0, %v2594_v0 }
 0x854   :  { %2196 = vmatprep.subr.mxu0 %v2594_v0 }
 0x855   :  { %2197 = vmatpush3.msra.mxu0 %v2688_v4 }
 0x856   :  { %2198 = vmatprep.subr.mxu0 %v2594_v0 }
 0x857   :  { %2199 = vmatpush3.msra.mxu0 %v2691_v5 }
 0x858   :  { %2200 = vmatprep.subr.mxu0 %v2594_v0 }
 0x859   :  { %2201 = vmatpush3.msra.mxu0 %v2696_v6 }
 0x85a   :  { %2216 = vmatprep.subr.mxu0 %v2594_v0 }
 0x912   :  { %v561_v7 = vpop.f32.mrf.mxu0 }
 0x913   :  { %v565_v8 = vadd.f32 %v561_v7, %v492_v2 }
 0x914   :  { %v2182_v9 = vpop.f32.mrf.mxu0 }
 0x915   :  { %2372 = vtanh.f32 %v565_v8  ;;  %v2014_v11 = vmul.f32 -1.442695, %v565_v8 }
 0x917   :  { %2374 = vpow2.f32 %v2014_v11 }
 0x922   :  { %v2373_v10 = vpop.eup %2372 }
 0x923   :  { %575 = vrot.lane.b32.xlu0 %v2373_v10, %s2596_s10 }
 0x924   :  { %v2375_v12 = vpop.eup %2374 }
 0x925   :  { %v569_v13 = vadd.f32 1.0, %v2375_v12 }
 0x927   :  { %2376 = vrcp.f32 %v569_v13 }
 0x934   :  { %v2377_v14 = vpop.eup %2376 }
 0x935   :  { %v573_v17 = vmul.f32 %v2377_v14, %v480_v60 }
 0x995   :  { %v576_v15 = vpop.permute.xlu0 %575 }
 0x996   :  { %v578_v16 = vmul.f32 %v2377_v14, %v576_v15  ;;  %v904_v15 = vld [vmem:[#allocation2 + $0x7] sm:$0x1] }
 0x998   :  { %580 = vrot.lane.b32.xlu1 %v578_v16, %s2597_s3 }
 0xa0a   :  { %v581_v18 = vpop.permute.xlu1 %580 }
 0xa0b   :  { %v583_v19 = vadd.f32 %v581_v18, %v573_v17 }
 0xa0d   :  { %2378 = vtanh.f32 %v583_v19 }
 0xa1a   :  { %v2379_v20 = vpop.eup %2378 }
 0xa1b   :  { %586 = vrot.lane.b32.xlu0 %v2379_v20, %s2596_s10 }
 0xa8d   :  { %v587_v21 = vpop.permute.xlu0 %586 }
 0xa8e   :  { %v589_v22 = vmul.f32 %v2377_v14, %v587_v21 }
 0xa90   :  { %591 = vrot.lane.b32.xlu1 %v589_v22, %s2597_s3 }
 0xb02   :  { %v592_v23 = vpop.permute.xlu1 %591 }
 0xb03   :  { %594 = vst.msk [vmem:[#allocation3 + $0x3] sm:$0x1] %vm284_vm3, %v592_v23  ;;  %2192 = vmatmul.mubr.msk.f32.vlgmr.msra.gmra.mxu1 %vm181_vm4, %v592_v23 }
 0xb04   :  { %2206 = vmatpush3.msra.mxu1 %v2685_v3  ;;  %2213 = vmatprep.mubr.msk.f32.mxu1 %vm2595_vm0, %v2594_v0 }
 0xb05   :  { %2207 = vmatprep.subr.mxu1 %v2594_v0 }
 0xb06   :  { %2208 = vmatpush3.msra.mxu1 %v2688_v4 }
 0xb07   :  { %2209 = vmatprep.subr.mxu1 %v2594_v0 }
 0xb08   :  { %2210 = vmatpush3.msra.mxu1 %v2691_v5 }
 0xb09   :  { %2211 = vmatprep.subr.mxu1 %v2594_v0 }
 0xb0a   :  { %2212 = vmatpush3.msra.mxu1 %v2696_v6 }
 0xb0b   :  { %2227 = vmatprep.subr.mxu1 %v2594_v0 }
 0xbc3   :  { %v664_v25 = vpop.f32.mrf.mxu1 }
 0xbc4   :  { %v668_v26 = vadd.f32 %v664_v25, %v595_v24 }
 0xbc5   :  { %v2193_v27 = vpop.f32.mrf.mxu1 }
 0xbc6   :  { %2380 = vtanh.f32 %v668_v26  ;;  %v2016_v29 = vmul.f32 -1.442695, %v668_v26 }
 0xbc8   :  { %2382 = vpow2.f32 %v2016_v29 }
 0xbd3   :  { %v2381_v28 = vpop.eup %2380 }
 0xbd4   :  { %678 = vrot.lane.b32.xlu0 %v2381_v28, %s2596_s10 }
 0xbd5   :  { %v2383_v30 = vpop.eup %2382 }
 0xbd6   :  { %v672_v31 = vadd.f32 1.0, %v2383_v30  ;;  %v1010_v30 = vld [vmem:[#allocation7 + $0x18] sm:$0xff] }
 0xbd8   :  { %2384 = vrcp.f32 %v672_v31  ;;  %v1009_v31 = vld [vmem:[#allocation7 + $0x10] sm:$0xff] }
 0xbe5   :  { %v2385_v32 = vpop.eup %2384 }
 0xbe6   :  { %v676_v35 = vmul.f32 %v2385_v32, %v583_v19 }
 0xc46   :  { %v679_v33 = vpop.permute.xlu0 %678 }
 0xc47   :  { %v681_v34 = vmul.f32 %v2385_v32, %v679_v33  ;;  %v1007_v33 = vld [vmem:[#allocation7] sm:$0xff] }
 0xc49   :  { %683 = vrot.lane.b32.xlu1 %v681_v34, %s2597_s3  ;;  %v2828_v34 = vld [vmem:[#allocation9 + $0x18] sm:$0xff] }
 0xcbb   :  { %v684_v36 = vpop.permute.xlu1 %683 }
 0xcbc   :  { %v686_v37 = vadd.f32 %v684_v36, %v676_v35  ;;  %v2830_v35 = vld [vmem:[#allocation9 + $0x10] sm:$0xff] }
 0xcbe   :  { %2386 = vtanh.f32 %v686_v37 }
 0xccb   :  { %v2387_v38 = vpop.eup %2386 }
 0xccc   :  { %689 = vrot.lane.b32.xlu0 %v2387_v38, %s2596_s10 }
 0xd3e   :  { %v690_v39 = vpop.permute.xlu0 %689 }
 0xd3f   :  { %v692_v40 = vmul.f32 %v2385_v32, %v690_v39  ;;  %v1008_v32 = vld [vmem:[#allocation7 + $0x8] sm:$0xff]  ;;  %v2839_v39 = vld [vmem:[#allocation9] sm:$0xff] }
 0xd41   :  { %694 = vrot.lane.b32.xlu1 %v692_v40, %s2597_s3 }
 0xdb3   :  { %v695_v41 = vpop.permute.xlu1 %694 }
 0xdb4   :  { %697 = vst.msk [vmem:[#allocation3 + $0x4] sm:$0x1] %vm284_vm3, %v695_v41  ;;  %2203 = vmatmul.mubr.msk.f32.vlgmr.msra.gmra.mxu0 %vm181_vm4, %v695_v41 }
 0xdb5   :  { %2217 = vmatpush3.msra.mxu0 %v2685_v3  ;;  %2224 = vmatprep.mubr.msk.f32.mxu0 %vm2595_vm0, %v2594_v0 }
 0xdb6   :  { %2218 = vmatprep.subr.mxu0 %v2594_v0 }
 0xdb7   :  { %2219 = vmatpush3.msra.mxu0 %v2688_v4 }
 0xdb8   :  { %2220 = vmatprep.subr.mxu0 %v2594_v0 }
 0xdb9   :  { %2221 = vmatpush3.msra.mxu0 %v2691_v5 }
 0xdba   :  { %2222 = vmatprep.subr.mxu0 %v2594_v0 }
 0xdbb   :  { %2223 = vmatpush3.msra.mxu0 %v2696_v6 }
 0xdbc   :  { %2238 = vmatprep.subr.mxu0 %v2594_v0 }
 0xe74   :  { %v767_v43 = vpop.f32.mrf.mxu0 }
 0xe75   :  { %v771_v3 = vadd.f32 %v767_v43, %v698_v42 }
 0xe76   :  { %v2204_v44 = vpop.f32.mrf.mxu0 }
 0xe77   :  { %2388 = vtanh.f32 %v771_v3  ;;  %v2018_v46 = vmul.f32 -1.442695, %v771_v3  ;;  %v2023_v3 = vld [vmem:[%s2978_s6] ss:$0 sm:$0xff] }
 0xe79   :  { %2390 = vpow2.f32 %v2018_v46 }
 0xe84   :  { %v2389_v45 = vpop.eup %2388 }
 0xe85   :  { %781 = vrot.lane.b32.xlu0 %v2389_v45, %s2596_s10 }
 0xe86   :  { %v2391_v4 = vpop.eup %2390 }
 0xe87   :  { %v775_v47 = vadd.f32 1.0, %v2391_v4 }
 0xe89   :  { %2392 = vrcp.f32 %v775_v47 }
 0xe96   :  { %v2393_v5 = vpop.eup %2392 }
 0xe97   :  { %v779_v6 = vmul.f32 %v2393_v5, %v686_v37  ;;  %v2835_v37 = vld [vmem:[#allocation9 + $0x8] sm:$0xff] }
 0xef7   :  { %v782_v48 = vpop.permute.xlu0 %781 }
 0xef8   :  { %v784_v49 = vmul.f32 %v2393_v5, %v782_v48 }
 0xefa   :  { %786 = vrot.lane.b32.xlu1 %v784_v49, %s2597_s3 }
 0xf6c   :  { %v787_v50 = vpop.permute.xlu1 %786 }
 0xf6d   :  { %v789_v51 = vadd.f32 %v787_v50, %v779_v6 }
 0xf6f   :  { %2394 = vtanh.f32 %v789_v51 }
 0xf7c   :  { %v2395_v52 = vpop.eup %2394 }
 0xf7d   :  { %792 = vrot.lane.b32.xlu0 %v2395_v52, %s2596_s10 }
 0xfef   :  { %v793_v53 = vpop.permute.xlu0 %792 }
 0xff0   :  { %v795_v54 = vmul.f32 %v2393_v5, %v793_v53 }
 0xff2   :  { %797 = vrot.lane.b32.xlu1 %v795_v54, %s2597_s3 }
0x1064   :  { %v798_v55 = vpop.permute.xlu1 %797 }
0x1065   :  { %800 = vst.msk [vmem:[#allocation3 + $0x5] sm:$0x1] %vm284_vm3, %v798_v55  ;;  %2214 = vmatmul.mubr.msk.f32.vlgmr.msra.gmra.mxu1 %vm181_vm4, %v798_v55 }
0x1066   :  { %2235 = vmatprep.mubr.msk.f32.mxu1 %vm2595_vm0, %v2594_v0  ;;  %2228 = vmatpush3.msra.mxu1 %v1010_v30 }
0x1067   :  { %2229 = vmatprep.subr.mxu1 %v2594_v0 }
0x1068   :  { %2230 = vmatpush3.msra.mxu1 %v1009_v31 }
0x1069   :  { %2231 = vmatprep.subr.mxu1 %v2594_v0 }
0x106a   :  { %2232 = vmatpush3.msra.mxu1 %v1008_v32 }
0x106b   :  { %2233 = vmatprep.subr.mxu1 %v2594_v0 }
0x106c   :  { %2234 = vmatpush3.msra.mxu1 %v1007_v33 }
0x106d   :  { %2249 = vmatprep.subr.mxu1 %v2594_v0 }
0x1125   :  { %v870_v57 = vpop.f32.mrf.mxu1 }
0x1126   :  { %v874_v58 = vadd.f32 %v870_v57, %v801_v56 }
0x1127   :  { %v2215_v59 = vpop.f32.mrf.mxu1 }
0x1128   :  { %2396 = vtanh.f32 %v874_v58  ;;  %v2020_v61 = vmul.f32 -1.442695, %v874_v58 }
0x112a   :  { %2398 = vpow2.f32 %v2020_v61 }
0x1135   :  { %v2397_v60 = vpop.eup %2396 }
0x1136   :  { %884 = vrot.lane.b32.xlu0 %v2397_v60, %s2596_s10 }
0x1137   :  { %v2399_v62 = vpop.eup %2398 }
0x1138   :  { %v878_v63 = vadd.f32 1.0, %v2399_v62 }
0x113a   :  { %2400 = vrcp.f32 %v878_v63 }
0x1147   :  { %v2401_v1 = vpop.eup %2400 }
0x1148   :  { %v882_v8 = vmul.f32 %v2401_v1, %v789_v51 }
0x11a8   :  { %v885_v2 = vpop.permute.xlu0 %884 }
0x11a9   :  { %v887_v7 = vmul.f32 %v2401_v1, %v885_v2 }
0x11ab   :  { %889 = vrot.lane.b32.xlu1 %v887_v7, %s2597_s3 }
0x121d   :  { %v890_v9 = vpop.permute.xlu1 %889 }
0x121e   :  { %v892_v10 = vadd.f32 %v890_v9, %v882_v8 }
0x1220   :  { %2402 = vtanh.f32 %v892_v10 }
0x122d   :  { %v2403_v11 = vpop.eup %2402 }
0x122e   :  { %895 = vrot.lane.b32.xlu0 %v2403_v11, %s2596_s10 }
0x12a0   :  { %v896_v12 = vpop.permute.xlu0 %895 }
0x12a1   :  { %v898_v13 = vmul.f32 %v2401_v1, %v896_v12 }
0x12a3   :  { %900 = vrot.lane.b32.xlu1 %v898_v13, %s2597_s3 }
0x1315   :  { %v901_v14 = vpop.permute.xlu1 %900 }
0x1316   :  { %903 = vst.msk [vmem:[#allocation3 + $0x6] sm:$0x1] %vm284_vm3, %v901_v14  ;;  %2225 = vmatmul.mubr.msk.f32.vlgmr.msra.gmra.mxu0 %vm181_vm4, %v901_v14 }
0x1317   :  { %2246 = vmatprep.mubr.msk.f32.mxu0 %vm2595_vm0, %v2594_v0  ;;  %2239 = vmatpush3.msra.mxu0 %v2828_v34 }
0x1318   :  { %2240 = vmatprep.subr.mxu0 %v2594_v0 }
0x1319   :  { %2241 = vmatpush3.msra.mxu0 %v2830_v35 }
0x131a   :  { %2242 = vmatprep.subr.mxu0 %v2594_v0 }
0x131b   :  { %2243 = vmatpush3.msra.mxu0 %v2835_v37 }
0x131c   :  { %2244 = vmatprep.subr.mxu0 %v2594_v0 }
0x131d   :  { %2245 = vmatpush3.msra.mxu0 %v2839_v39 }
0x131e   :  { %2247 = vmatmul.mubr.f32.vlgmr.msra.gmra.mxu0 %v2594_v0  ;;  %2260 = vmatprep.subr.mxu0 %v2594_v0 }
0x131f   :  { %2261 = vmatpush3.msra.mxu0 %v2828_v34  ;;  %2268 = vmatprep.mubr.msk.f32.mxu0 %vm2595_vm0, %v2594_v0 }
0x1320   :  { %2262 = vmatprep.subr.mxu0 %v2594_v0 }
0x1321   :  { %2263 = vmatpush3.msra.mxu0 %v2830_v35 }
0x1322   :  { %2264 = vmatprep.subr.mxu0 %v2594_v0 }
0x1323   :  { %2265 = vmatpush3.msra.mxu0 %v2835_v37 }
0x1324   :  { %2266 = vmatprep.subr.mxu0 %v2594_v0 }
0x1325   :  { %2267 = vmatpush3.msra.mxu0 %v2839_v39 }
0x1326   :  { %2282 = vmatprep.subr.mxu0 %v2594_v0 }
0x13d6   :  { %v973_v16 = vpop.f32.mrf.mxu0 }
0x13d7   :  { %v977_v17 = vadd.f32 %v973_v16, %v904_v15 }
0x13d8   :  { %v2226_v18 = vpop.f32.mrf.mxu0 }
0x13d9   :  { %2404 = vtanh.f32 %v977_v17  ;;  %v2022_v20 = vmul.f32 -1.442695, %v977_v17 }
0x13db   :  { %2406 = vpow2.f32 %v2022_v20 }
0x13de   :  { %v1164_v42 = vpop.f32.mrf.mxu0 }
0x13e0   :  { %v2248_v43 = vpop.f32.mrf.mxu0 }
0x13e6   :  { %v2405_v19 = vpop.eup %2404 }
0x13e7   :  { %987 = vrot.lane.b32.xlu0 %v2405_v19, %s2596_s10 }
0x13e8   :  { %v2407_v21 = vpop.eup %2406 }
0x13e9   :  { %v981_v22 = vadd.f32 1.0, %v2407_v21 }
0x13eb   :  { %2408 = vrcp.f32 %v981_v22 }
0x13f8   :  { %v2409_v23 = vpop.eup %2408 }
0x13f9   :  { %v985_v26 = vmul.f32 %v2409_v23, %v892_v10 }
0x1459   :  { %v988_v24 = vpop.permute.xlu0 %987 }
0x145a   :  { %v990_v25 = vmul.f32 %v2409_v23, %v988_v24 }
0x145c   :  { %992 = vrot.lane.b32.xlu1 %v990_v25, %s2597_s3 }
0x14ce   :  { %v993_v27 = vpop.permute.xlu1 %992 }
0x14cf   :  { %v995_v28 = vadd.f32 %v993_v27, %v985_v26 }
0x14d1   :  { %2410 = vtanh.f32 %v995_v28 }
0x14de   :  { %v2411_v29 = vpop.eup %2410 }
0x14df   :  { %998 = vrot.lane.b32.xlu0 %v2411_v29, %s2596_s10 }
0x1551   :  { %v999_v36 = vpop.permute.xlu0 %998 }
0x1552   :  { %v1001_v38 = vmul.f32 %v2409_v23, %v999_v36 }
0x1554   :  { %1003 = vrot.lane.b32.xlu1 %v1001_v38, %s2597_s3 }
0x15c6   :  { %v1004_v40 = vpop.permute.xlu1 %1003 }
0x15c7   :  { %1006 = vst.msk [vmem:[#allocation3 + $0x7] sm:$0x1] %vm284_vm3, %v1004_v40 }
0x15ce   :  { %v1016_v41 = vld [vmem:[#allocation3] sm:$0xff] }
0x15cf   :  { %2236 = vmatmul.mubr.msk.f32.vlgmr.msra.gmra.mxu1 %vm181_vm4, %v1016_v41 }
0x15d0   :  { %2250 = vmatpush3.msra.mxu1 %v2828_v34  ;;  %2257 = vmatprep.mubr.msk.f32.mxu1 %vm2595_vm0, %v2594_v0 }
0x15d1   :  { %2251 = vmatprep.subr.mxu1 %v2594_v0 }
0x15d2   :  { %2252 = vmatpush3.msra.mxu1 %v2830_v35 }
0x15d3   :  { %2253 = vmatprep.subr.mxu1 %v2594_v0 }
0x15d4   :  { %2254 = vmatpush3.msra.mxu1 %v2835_v37 }
0x15d5   :  { %2255 = vmatprep.subr.mxu1 %v2594_v0 }
0x15d6   :  { %2256 = vmatpush3.msra.mxu1 %v2839_v39 }
0x15d7   :  { %2271 = vmatprep.subr.mxu1 %v2594_v0 }
0x168f   :  { %v1092_v44 = vpop.f32.mrf.mxu1 }
0x1690   :  { %v1093_v45 = vadd.f32 %v2023_v3, %v1092_v44 }
0x1691   :  { %v2237_v46 = vpop.f32.mrf.mxu1 }
0x1692   :  { %1096 = vst [vmem:[#allocation2] sm:$0xff] %v1093_v45 }
0x1699   :  { %v1097_v4 = vld [vmem:[#allocation2] sm:$0x1]  ;;  %v1193_v60 = vld [vmem:[#allocation2 + $0x1] sm:$0x1]  ;;  %v1294_v19 = vld [vmem:[#allocation2 + $0x2] sm:$0x1] }
0x169a   :  { %v1168_v47 = vadd.f32 %v1164_v42, %v1097_v4  ;;  %v1395_v41 = vld [vmem:[#allocation2 + $0x3] sm:$0x1] }
0x169c   :  { %2412 = vtanh.f32 %v1168_v47  ;;  %v2025_v48 = vmul.f32 -1.442695, %v1168_v47 }
0x169e   :  { %2414 = vpow2.f32 %v2025_v48 }
0x16a9   :  { %v2413_v5 = vpop.eup %2412 }
0x16aa   :  { %1178 = vrot.lane.b32.xlu0 %v2413_v5, %s2596_s10 }
0x16ab   :  { %v2415_v49 = vpop.eup %2414 }
0x16ac   :  { %v1172_v6 = vadd.f32 1.0, %v2415_v49 }
0x16ae   :  { %2416 = vrcp.f32 %v1172_v6 }
0x16bb   :  { %v2417_v50 = vpop.eup %2416 }
0x16bc   :  { %v1176_v53 = vmul.f32 0.0, %v2417_v50 }
0x171c   :  { %v1179_v51 = vpop.permute.xlu0 %1178 }
0x171d   :  { %v1181_v52 = vmul.f32 %v2417_v50, %v1179_v51 }
0x171f   :  { %1183 = vrot.lane.b32.xlu1 %v1181_v52, %s2597_s3 }
0x1791   :  { %v1184_v54 = vpop.permute.xlu1 %1183 }
0x1792   :  { %v1186_v55 = vadd.f32 %v1184_v54, %v1176_v53 }
0x1794   :  { %2418 = vtanh.f32 %v1186_v55 }
0x17a1   :  { %v2419_v56 = vpop.eup %2418 }
0x17a2   :  { %1189 = vrot.lane.b32.xlu0 %v2419_v56, %s2596_s10 }
0x1814   :  { %v1190_v57 = vpop.permute.xlu0 %1189 }
0x1815   :  { %v1192_v58 = vmul.f32 %v2417_v50, %v1190_v57 }
0x1817   :  { %1195 = vrot.lane.b32.xlu1 %v1192_v58, %s2597_s3 }
0x1889   :  { %v1196_v59 = vpop.permute.xlu1 %1195 }
0x188a   :  { %2258 = vmatmul.mubr.msk.f32.vlgmr.msra.gmra.mxu1 %vm181_vm4, %v1196_v59 }
0x188b   :  { %2272 = vmatpush3.msra.mxu1 %v2828_v34  ;;  %2279 = vmatprep.mubr.msk.f32.mxu1 %vm2595_vm0, %v2594_v0 }
0x188c   :  { %2273 = vmatprep.subr.mxu1 %v2594_v0 }
0x188d   :  { %2274 = vmatpush3.msra.mxu1 %v2830_v35 }
0x188e   :  { %2275 = vmatprep.subr.mxu1 %v2594_v0 }
0x188f   :  { %2276 = vmatpush3.msra.mxu1 %v2835_v37 }
0x1890   :  { %2277 = vmatprep.subr.mxu1 %v2594_v0 }
0x1891   :  { %2278 = vmatpush3.msra.mxu1 %v2839_v39 }
0x1892   :  { %2293 = vmatprep.subr.mxu1 %v2594_v0 }
0x194a   :  { %v1265_v61 = vpop.f32.mrf.mxu1 }
0x194b   :  { %v1269_v62 = vadd.f32 %v1265_v61, %v1193_v60 }
0x194c   :  { %v2259_v63 = vpop.f32.mrf.mxu1 }
0x194d   :  { %2420 = vtanh.f32 %v1269_v62  ;;  %v2027_v2 = vmul.f32 -1.442695, %v1269_v62 }
0x194f   :  { %2422 = vpow2.f32 %v2027_v2 }
0x195a   :  { %v2421_v1 = vpop.eup %2420 }
0x195b   :  { %1279 = vrot.lane.b32.xlu0 %v2421_v1, %s2596_s10 }
0x195c   :  { %v2423_v7 = vpop.eup %2422 }
0x195d   :  { %v1273_v8 = vadd.f32 1.0, %v2423_v7 }
0x195f   :  { %2424 = vrcp.f32 %v1273_v8 }
0x196c   :  { %v2425_v9 = vpop.eup %2424 }
0x196d   :  { %v1277_v12 = vmul.f32 %v2425_v9, %v1186_v55  ;;  %v1496_v55 = vld [vmem:[#allocation2 + $0x4] sm:$0x1] }
0x19cd   :  { %v1280_v10 = vpop.permute.xlu0 %1279 }
0x19ce   :  { %v1282_v11 = vmul.f32 %v2425_v9, %v1280_v10 }
0x19d0   :  { %1284 = vrot.lane.b32.xlu1 %v1282_v11, %s2597_s3 }
0x1a42   :  { %v1285_v13 = vpop.permute.xlu1 %1284 }
0x1a43   :  { %v1287_v14 = vadd.f32 %v1285_v13, %v1277_v12 }
0x1a45   :  { %2426 = vtanh.f32 %v1287_v14 }
0x1a52   :  { %v2427_v15 = vpop.eup %2426 }
0x1a53   :  { %1290 = vrot.lane.b32.xlu0 %v2427_v15, %s2596_s10 }
0x1ac5   :  { %v1291_v16 = vpop.permute.xlu0 %1290 }
0x1ac6   :  { %v1293_v17 = vmul.f32 %v2425_v9, %v1291_v16 }
0x1ac8   :  { %1296 = vrot.lane.b32.xlu1 %v1293_v17, %s2597_s3 }
0x1b3a   :  { %v1297_v18 = vpop.permute.xlu1 %1296 }
0x1b3b   :  { %2269 = vmatmul.mubr.msk.f32.vlgmr.msra.gmra.mxu0 %vm181_vm4, %v1297_v18 }
0x1b3c   :  { %2283 = vmatpush3.msra.mxu0 %v2828_v34  ;;  %2290 = vmatprep.mubr.msk.f32.mxu0 %vm2595_vm0, %v2594_v0 }
0x1b3d   :  { %2284 = vmatprep.subr.mxu0 %v2594_v0 }
0x1b3e   :  { %2285 = vmatpush3.msra.mxu0 %v2830_v35 }
0x1b3f   :  { %2286 = vmatprep.subr.mxu0 %v2594_v0 }
0x1b40   :  { %2287 = vmatpush3.msra.mxu0 %v2835_v37 }
0x1b41   :  { %2288 = vmatprep.subr.mxu0 %v2594_v0 }
0x1b42   :  { %2289 = vmatpush3.msra.mxu0 %v2839_v39 }
0x1b43   :  { %2304 = vmatprep.subr.mxu0 %v2594_v0 }
0x1bfb   :  { %v1366_v20 = vpop.f32.mrf.mxu0 }
0x1bfc   :  { %v1370_v21 = vadd.f32 %v1366_v20, %v1294_v19 }
0x1bfd   :  { %v2270_v22 = vpop.f32.mrf.mxu0 }
0x1bfe   :  { %2428 = vtanh.f32 %v1370_v21  ;;  %v2029_v24 = vmul.f32 -1.442695, %v1370_v21 }
0x1c00   :  { %2430 = vpow2.f32 %v2029_v24 }
0x1c0b   :  { %v2429_v23 = vpop.eup %2428 }
0x1c0c   :  { %1380 = vrot.lane.b32.xlu0 %v2429_v23, %s2596_s10 }
0x1c0d   :  { %v2431_v25 = vpop.eup %2430 }
0x1c0e   :  { %v1374_v26 = vadd.f32 1.0, %v2431_v25 }
0x1c10   :  { %2432 = vrcp.f32 %v1374_v26 }
0x1c1d   :  { %v2433_v27 = vpop.eup %2432 }
0x1c1e   :  { %v1378_v30 = vmul.f32 %v2433_v27, %v1287_v14  ;;  %v1597_v14 = vld [vmem:[#allocation2 + $0x5] sm:$0x1] }
0x1c7e   :  { %v1381_v28 = vpop.permute.xlu0 %1380 }
0x1c7f   :  { %v1383_v29 = vmul.f32 %v2433_v27, %v1381_v28  ;;  %v1698_v28 = vld [vmem:[#allocation2 + $0x6] sm:$0x1] }
0x1c81   :  { %1385 = vrot.lane.b32.xlu1 %v1383_v29, %s2597_s3 }
0x1cf3   :  { %v1386_v31 = vpop.permute.xlu1 %1385 }
0x1cf4   :  { %v1388_v32 = vadd.f32 %v1386_v31, %v1378_v30 }
0x1cf6   :  { %2434 = vtanh.f32 %v1388_v32 }
0x1d03   :  { %v2435_v33 = vpop.eup %2434 }
0x1d04   :  { %1391 = vrot.lane.b32.xlu0 %v2435_v33, %s2596_s10 }
0x1d76   :  { %v1392_v36 = vpop.permute.xlu0 %1391 }
0x1d77   :  { %v1394_v38 = vmul.f32 %v2433_v27, %v1392_v36 }
0x1d79   :  { %1397 = vrot.lane.b32.xlu1 %v1394_v38, %s2597_s3 }
0x1deb   :  { %v1398_v40 = vpop.permute.xlu1 %1397 }
0x1dec   :  { %2280 = vmatmul.mubr.msk.f32.vlgmr.msra.gmra.mxu1 %vm181_vm4, %v1398_v40 }
0x1ded   :  { %2294 = vmatpush3.msra.mxu1 %v2828_v34  ;;  %2301 = vmatprep.mubr.msk.f32.mxu1 %vm2595_vm0, %v2594_v0 }
0x1dee   :  { %2295 = vmatprep.subr.mxu1 %v2594_v0 }
0x1def   :  { %2296 = vmatpush3.msra.mxu1 %v2830_v35 }
0x1df0   :  { %2297 = vmatprep.subr.mxu1 %v2594_v0 }
0x1df1   :  { %2298 = vmatpush3.msra.mxu1 %v2835_v37 }
0x1df2   :  { %2299 = vmatprep.subr.mxu1 %v2594_v0 }
0x1df3   :  { %2300 = vmatpush3.msra.mxu1 %v2839_v39 }
0x1df4   :  { %2315 = vmatprep.subr.mxu1 %v2594_v0 }
0x1eac   :  { %v1467_v42 = vpop.f32.mrf.mxu1 }
0x1ead   :  { %v1471_v43 = vadd.f32 %v1467_v42, %v1395_v41 }
0x1eae   :  { %v2281_v3 = vpop.f32.mrf.mxu1 }
0x1eaf   :  { %2436 = vtanh.f32 %v1471_v43  ;;  %v2031_v45 = vmul.f32 -1.442695, %v1471_v43 }
0x1eb1   :  { %2438 = vpow2.f32 %v2031_v45 }
0x1ebc   :  { %v2437_v44 = vpop.eup %2436 }
0x1ebd   :  { %1481 = vrot.lane.b32.xlu0 %v2437_v44, %s2596_s10 }
0x1ebe   :  { %v2439_v46 = vpop.eup %2438 }
0x1ebf   :  { %v1475_v4 = vadd.f32 1.0, %v2439_v46 }
0x1ec1   :  { %2440 = vrcp.f32 %v1475_v4 }
0x1ece   :  { %v2441_v47 = vpop.eup %2440 }
0x1ecf   :  { %v1479_v49 = vmul.f32 %v2441_v47, %v1388_v32 }
0x1f2f   :  { %v1482_v5 = vpop.permute.xlu0 %1481 }
0x1f30   :  { %v1484_v48 = vmul.f32 %v2441_v47, %v1482_v5  ;;  %v1799_v5 = vld [vmem:[#allocation2 + $0x7] sm:$0x1] }
0x1f32   :  { %1486 = vrot.lane.b32.xlu1 %v1484_v48, %s2597_s3 }
0x1fa4   :  { %v1487_v6 = vpop.permute.xlu1 %1486 }
0x1fa5   :  { %v1489_v50 = vadd.f32 %v1487_v6, %v1479_v49 }
0x1fa7   :  { %2442 = vtanh.f32 %v1489_v50 }
0x1fb4   :  { %v2443_v51 = vpop.eup %2442 }
0x1fb5   :  { %1492 = vrot.lane.b32.xlu0 %v2443_v51, %s2596_s10 }
0x2027   :  { %v1493_v52 = vpop.permute.xlu0 %1492 }
0x2028   :  { %v1495_v53 = vmul.f32 %v2441_v47, %v1493_v52 }
0x202a   :  { %1498 = vrot.lane.b32.xlu1 %v1495_v53, %s2597_s3 }
0x209c   :  { %v1499_v54 = vpop.permute.xlu1 %1498 }
0x209d   :  { %2291 = vmatmul.mubr.msk.f32.vlgmr.msra.gmra.mxu0 %vm181_vm4, %v1499_v54 }
0x209e   :  { %2305 = vmatpush3.msra.mxu0 %v2828_v34  ;;  %2312 = vmatprep.mubr.msk.f32.mxu0 %vm2595_vm0, %v2594_v0 }
0x209f   :  { %2306 = vmatprep.subr.mxu0 %v2594_v0 }
0x20a0   :  { %2307 = vmatpush3.msra.mxu0 %v2830_v35 }
0x20a1   :  { %2308 = vmatprep.subr.mxu0 %v2594_v0 }
0x20a2   :  { %2309 = vmatpush3.msra.mxu0 %v2835_v37 }
0x20a3   :  { %2310 = vmatprep.subr.mxu0 %v2594_v0 }
0x20a4   :  { %2311 = vmatpush3.msra.mxu0 %v2839_v39 }
0x20a5   :  { %2326 = vmatprep.subr.mxu0 %v2594_v0 }
0x215d   :  { %v1568_v56 = vpop.f32.mrf.mxu0 }
0x215e   :  { %v1572_v57 = vadd.f32 %v1568_v56, %v1496_v55 }
0x215f   :  { %v2292_v58 = vpop.f32.mrf.mxu0 }
0x2160   :  { %2444 = vtanh.f32 %v1572_v57  ;;  %v2033_v60 = vmul.f32 -1.442695, %v1572_v57 }
0x2162   :  { %2446 = vpow2.f32 %v2033_v60  ;;  %v1903_v60 = vld [vmem:[#allocation10 + $0x18] sm:$0xff] }
0x216d   :  { %v2445_v59 = vpop.eup %2444 }
0x216e   :  { %1582 = vrot.lane.b32.xlu0 %v2445_v59, %s2596_s10 }
0x216f   :  { %v2447_v61 = vpop.eup %2446 }
0x2170   :  { %v1576_v62 = vadd.f32 1.0, %v2447_v61  ;;  %v1902_v61 = vld [vmem:[#allocation10 + $0x10] sm:$0xff] }
0x2172   :  { %2448 = vrcp.f32 %v1576_v62  ;;  %v1901_v62 = vld [vmem:[#allocation10 + $0x8] sm:$0xff] }
0x217f   :  { %v2449_v63 = vpop.eup %2448 }
0x2180   :  { %v1580_v7 = vmul.f32 %v2449_v63, %v1489_v50 }
0x21e0   :  { %v1583_v1 = vpop.permute.xlu0 %1582 }
0x21e1   :  { %v1585_v2 = vmul.f32 %v2449_v63, %v1583_v1 }
0x21e3   :  { %1587 = vrot.lane.b32.xlu1 %v1585_v2, %s2597_s3 }
0x2255   :  { %v1588_v8 = vpop.permute.xlu1 %1587 }
0x2256   :  { %v1590_v9 = vadd.f32 %v1588_v8, %v1580_v7 }
0x2258   :  { %2450 = vtanh.f32 %v1590_v9 }
0x2265   :  { %v2451_v10 = vpop.eup %2450 }
0x2266   :  { %1593 = vrot.lane.b32.xlu0 %v2451_v10, %s2596_s10 }
0x22d8   :  { %v1594_v11 = vpop.permute.xlu0 %1593 }
0x22d9   :  { %v1596_v12 = vmul.f32 %v2449_v63, %v1594_v11  ;;  %v1900_v63 = vld [vmem:[#allocation10] sm:$0xff] }
0x22db   :  { %1599 = vrot.lane.b32.xlu1 %v1596_v12, %s2597_s3 }
0x234d   :  { %v1600_v13 = vpop.permute.xlu1 %1599 }
0x234e   :  { %2302 = vmatmul.mubr.msk.f32.vlgmr.msra.gmra.mxu1 %vm181_vm4, %v1600_v13 }
0x234f   :  { %2316 = vmatpush3.msra.mxu1 %v2828_v34  ;;  %2323 = vmatprep.mubr.msk.f32.mxu1 %vm2595_vm0, %v2594_v0 }
0x2350   :  { %2317 = vmatprep.subr.mxu1 %v2594_v0 }
0x2351   :  { %2318 = vmatpush3.msra.mxu1 %v2830_v35 }
0x2352   :  { %2319 = vmatprep.subr.mxu1 %v2594_v0 }
0x2353   :  { %2320 = vmatpush3.msra.mxu1 %v2835_v37 }
0x2354   :  { %2321 = vmatprep.subr.mxu1 %v2594_v0 }
0x2355   :  { %2322 = vmatpush3.msra.mxu1 %v2839_v39 }
0x240e   :  { %v1669_v15 = vpop.f32.mrf.mxu1 }
0x240f   :  { %v1673_v16 = vadd.f32 %v1669_v15, %v1597_v14 }
0x2410   :  { %v2303_v17 = vpop.f32.mrf.mxu1 }
0x2411   :  { %2452 = vtanh.f32 %v1673_v16  ;;  %v2035_v18 = vmul.f32 -1.442695, %v1673_v16 }
0x2413   :  { %2454 = vpow2.f32 %v2035_v18 }
0x241e   :  { %v2453_v34 = vpop.eup %2452 }
0x241f   :  { %1683 = vrot.lane.b32.xlu0 %v2453_v34, %s2596_s10 }
0x2420   :  { %v2455_v19 = vpop.eup %2454 }
0x2421   :  { %v1677_v35 = vadd.f32 1.0, %v2455_v19 }
0x2423   :  { %2456 = vrcp.f32 %v1677_v35 }
0x2430   :  { %v2457_v20 = vpop.eup %2456 }
0x2431   :  { %v1681_v22 = vmul.f32 %v2457_v20, %v1590_v9  ;;  %v1904_v9 = vld [vmem:[%s2980_s8] sm:$0x1] }
0x2491   :  { %v1684_v21 = vpop.permute.xlu0 %1683 }
0x2492   :  { %v1686_v37 = vmul.f32 %v2457_v20, %v1684_v21 }
0x2494   :  { %1688 = vrot.lane.b32.xlu1 %v1686_v37, %s2597_s3 }
0x2506   :  { %v1689_v39 = vpop.permute.xlu1 %1688 }
0x2507   :  { %v1691_v23 = vadd.f32 %v1689_v39, %v1681_v22 }
0x2509   :  { %2458 = vtanh.f32 %v1691_v23 }
0x2516   :  { %v2459_v24 = vpop.eup %2458 }
0x2517   :  { %1694 = vrot.lane.b32.xlu0 %v2459_v24, %s2596_s10 }
0x2589   :  { %v1695_v25 = vpop.permute.xlu0 %1694 }
0x258a   :  { %v1697_v26 = vmul.f32 %v2457_v20, %v1695_v25 }
0x258c   :  { %1700 = vrot.lane.b32.xlu1 %v1697_v26, %s2597_s3 }
0x25fe   :  { %v1701_v27 = vpop.permute.xlu1 %1700 }
0x25ff   :  { %2313 = vmatmul.mubr.msk.f32.vlgmr.msra.gmra.mxu0 %vm181_vm4, %v1701_v27 }
0x2600   :  { %2334 = vmatprep.mubr.msk.f32.mxu0 %vm2595_vm0, %v2594_v0  ;;  %2327 = vmatpush3.msra.mxu0 %v1903_v60 }
0x2601   :  { %2328 = vmatprep.subr.mxu0 %v2594_v0 }
0x2602   :  { %2329 = vmatpush3.msra.mxu0 %v1902_v61 }
0x2603   :  { %2330 = vmatprep.subr.mxu0 %v2594_v0 }
0x2604   :  { %2331 = vmatpush3.msra.mxu0 %v1901_v62 }
0x2605   :  { %2332 = vmatprep.subr.mxu0 %v2594_v0 }
0x2606   :  { %2333 = vmatpush3.msra.mxu0 %v1900_v63 }
0x26bf   :  { %v1770_v29 = vpop.f32.mrf.mxu0 }
0x26c0   :  { %v1774_v30 = vadd.f32 %v1770_v29, %v1698_v28 }
0x26c1   :  { %v2314_v31 = vpop.f32.mrf.mxu0 }
0x26c2   :  { %2460 = vtanh.f32 %v1774_v30  ;;  %v2037_v33 = vmul.f32 -1.442695, %v1774_v30 }
0x26c4   :  { %2462 = vpow2.f32 %v2037_v33 }
0x26cf   :  { %v2461_v32 = vpop.eup %2460 }
0x26d0   :  { %1784 = vrot.lane.b32.xlu0 %v2461_v32, %s2596_s10 }
0x26d1   :  { %v2463_v36 = vpop.eup %2462 }
0x26d2   :  { %v1778_v38 = vadd.f32 1.0, %v2463_v36 }
0x26d4   :  { %2464 = vrcp.f32 %v1778_v38 }
0x26e1   :  { %v2465_v40 = vpop.eup %2464 }
0x26e2   :  { %v1782_v43 = vmul.f32 %v2465_v40, %v1691_v23 }
0x2742   :  { %v1785_v41 = vpop.permute.xlu0 %1784 }
0x2743   :  { %v1787_v42 = vmul.f32 %v2465_v40, %v1785_v41 }
0x2745   :  { %1789 = vrot.lane.b32.xlu1 %v1787_v42, %s2597_s3 }
0x27b7   :  { %v1790_v3 = vpop.permute.xlu1 %1789 }
0x27b8   :  { %v1792_v44 = vadd.f32 %v1790_v3, %v1782_v43 }
0x27ba   :  { %2466 = vtanh.f32 %v1792_v44 }
0x27c7   :  { %v2467_v45 = vpop.eup %2466 }
0x27c8   :  { %1795 = vrot.lane.b32.xlu0 %v2467_v45, %s2596_s10 }
0x283a   :  { %v1796_v46 = vpop.permute.xlu0 %1795 }
0x283b   :  { %v1798_v4 = vmul.f32 %v2465_v40, %v1796_v46 }
0x283d   :  { %1801 = vrot.lane.b32.xlu1 %v1798_v4, %s2597_s3 }
0x28af   :  { %v1802_v47 = vpop.permute.xlu1 %1801 }
0x28b0   :  { %2324 = vmatmul.mubr.msk.f32.vlgmr.msra.gmra.mxu1 %vm181_vm4, %v1802_v47 }
0x2970   :  { %v1871_v48 = vpop.f32.mrf.mxu1 }
0x2971   :  { %v1875_v49 = vadd.f32 %v1871_v48, %v1799_v5 }
0x2972   :  { %v2325_v6 = vpop.f32.mrf.mxu1 }
0x2973   :  { %2468 = vtanh.f32 %v1875_v49  ;;  %v2039_v51 = vmul.f32 -1.442695, %v1875_v49 }
0x2975   :  { %2470 = vpow2.f32 %v2039_v51 }
0x2980   :  { %v2469_v50 = vpop.eup %2468 }
0x2981   :  { %1885 = vrot.lane.b32.xlu0 %v2469_v50, %s2596_s10 }
0x2982   :  { %v2471_v52 = vpop.eup %2470 }
0x2983   :  { %v1879_v53 = vadd.f32 1.0, %v2471_v52 }
0x2985   :  { %2472 = vrcp.f32 %v1879_v53 }
0x2992   :  { %v2473_v54 = vpop.eup %2472 }
0x2993   :  { %v1883_v57 = vmul.f32 %v2473_v54, %v1792_v44 }
0x29f3   :  { %v1886_v55 = vpop.permute.xlu0 %1885 }
0x29f4   :  { %v1888_v56 = vmul.f32 %v2473_v54, %v1886_v55 }
0x29f6   :  { %1890 = vrot.lane.b32.xlu1 %v1888_v56, %s2597_s3 }
0x2a68   :  { %v1891_v58 = vpop.permute.xlu1 %1890 }
0x2a69   :  { %v1893_v59 = vadd.f32 %v1891_v58, %v1883_v57 }
0x2a6b   :  { %2474 = vtanh.f32 %v1893_v59 }
0x2a78   :  { %v2475_v1 = vpop.eup %2474 }
0x2a79   :  { %1896 = vrot.lane.b32.xlu0 %v2475_v1, %s2596_s10 }
0x2aeb   :  { %v1897_v2 = vpop.permute.xlu0 %1896 }
0x2aec   :  { %v1899_v7 = vmul.f32 %v2473_v54, %v1897_v2 }
0x2aee   :  { %1906 = vrot.lane.b32.xlu1 %v1899_v7, %s2597_s3 }
0x2b60   :  { %v1907_v8 = vpop.permute.xlu1 %1906 }
0x2b61   :  { %2335 = vmatmul.mubr.msk.f32.vlgmr.msra.gmra.mxu0 %vm181_vm4, %v1907_v8 }
0x2c21   :  { %v1976_v10 = vpop.f32.mrf.mxu0 }
0x2c22   :  { %v1977_v11 = vadd.f32 %v1976_v10, %v1904_v9 }
0x2c23   :  { %v2336_v12 = vpop.f32.mrf.mxu0 }
0x2c24   :  { %v2041_v13 = vmul.f32 -1.442695, %v1977_v11 }
0x2c26   :  { %2476 = vpow2.f32 %v2041_v13 }
0x2c33   :  { %v2477_v0 = vpop.eup %2476 }
0x2c34   :  { %v1983_v14 = vadd.f32 1.0, %v2477_v0 }
0x2c36   :  { %2478 = vrcp.f32 %v1983_v14 }
0x2c43   :  { %v2479_v15 = vpop.eup %2478 }
0x2c44   :  { %1987 = vst.msk [vmem:[#allocation12] sm:$0x1] %vm1986_vm5, %v2479_v15 }
0x2c45   :  { %2571 = shalt.err (!%p2568_p10)
}
0x2c46   :  { %1997 = dma.vmem_to_hbm [thread:$0]  %s1995_s15, 16, %s2981_s9, [#allocation6]  }
0x2c47   :  { %2586 = dma.done.wait [#allocation6], 16  }
0x2c48   :  { %2587 = vsyncadd [#allocation6], 4294967280 }
0x2c49   :  { %2001 = vsyncpa [#allocation5], 1 }
0x2c4a   :  { %2002 = vsyncpa [#allocation8], 1 }
0x2c4b   :  { %2003 = vsyncpa [#allocation11], 1 }
0x2c4c   :  { %2004 = vsyncpa [#allocation6], 1 }

</bundles_post_ra>
